<compile_context>
chip_gen: v6e
topology: v6e:2x2x1
jax: 0.10.0
libtpu: 0.0.40
codegen_flags: <defaults>
</compile_context>

<pallas_src>
import jax
import jax.numpy as jnp
from jax.experimental import pallas as pl
from jax.experimental.pallas import tpu as pltpu

# ---- Model config (residual widths equal the input-layer output width, same
# ---- constraint as the PyTorch module). ----
BATCH = 256                       # >=128 rows keeps the MXU tile full
INPUT_SIZE = 16
LAYERS = [32, 32, 32, 32, 32]     # len=5 -> 2 residual blocks of 2 layers each
OUTPUT_SIZE = 8
LAYERS_PER_BLOCK = 2
HIDDEN = LAYERS[0]                             # 32
N_BLOCK_LAYERS = ((len(LAYERS) - 1) // 2) * LAYERS_PER_BLOCK   # 4
N_BLOCKS = N_BLOCK_LAYERS // LAYERS_PER_BLOCK                  # 2

# ---- Packed-slab layout (lane-dense along the last axis) ----
K_PAD = 128                                    # padded contraction dim for layer_in
OUT_PAD = 128                                  # padded output lanes (unmasked store)
COL_IN = 0                                     # w_in   -> cols [0, 32)
COL_BLK = HIDDEN                               # blocks -> cols [32, 160)
COL_OUT = HIDDEN + N_BLOCK_LAYERS * HIDDEN     # w_out  -> cols [160, 288)
TOTAL_COLS = COL_OUT + OUT_PAD                 # 288


def resnet_kernel(x_ref, w_ref, b_ref, o_ref):
    """Full forward pass for one batch tile; all weights resident in VMEM.

    x_ref : (TM, K_PAD)        f32, zero-padded beyond the real input width
    w_ref : (K_PAD, TOTAL_COLS) bf16, packed [w_in | block layers | w_out(pad)]
    b_ref : (1, TOTAL_COLS)     f32, packed biases in the same column layout
    o_ref : (TM, OUT_PAD)       f32, lane-dense (real outputs in cols [:8])
    """
    H = HIDDEN

    def swish(o):
        # o * sigmoid(o); lax.logistic routes through the EUP slot.
        return o * jax.nn.sigmoid(o)

    # ---- Input layer (no activation, matching the PyTorch module). ----
    # K is padded to 128 with zero weight rows -> exact result, unmasked x load.
    xb = x_ref[...].astype(jnp.bfloat16)                     # (TM, 128)
    h = jnp.dot(xb, w_ref[:, COL_IN:COL_IN + H],
                preferred_element_type=jnp.float32) + b_ref[:, COL_IN:COL_IN + H]

    # ---- Residual blocks (static Python unroll; trip counts are tiny). ----
    for blk in range(N_BLOCKS):
        residual = h
        for j in range(LAYERS_PER_BLOCK):
            li = blk * LAYERS_PER_BLOCK + j
            off = COL_BLK + li * H
            w = w_ref[:H, off:off + H]                       # (32, 32) bf16 ref-slice
            b = b_ref[:, off:off + H]                        # (1, 32)  f32
            h = swish(jnp.dot(h.astype(jnp.bfloat16), w,
                              preferred_element_type=jnp.float32) + b)
        h = residual + h

    # ---- Output layer (no activation), padded to 128 lanes with zero cols. ----
    w_o = w_ref[:H, COL_OUT:COL_OUT + OUT_PAD]               # (32, 128) bf16
    b_o = b_ref[:, COL_OUT:COL_OUT + OUT_PAD]                # (1, 128)  f32
    out = jnp.dot(h.astype(jnp.bfloat16), w_o,
                  preferred_element_type=jnp.float32) + b_o
    o_ref[...] = out.astype(o_ref.dtype)                     # unmasked 128-lane store


def model_resnet_forward(x, w_slab, b_slab, *, tm=None):
    """x: (B, d_in) f32; w_slab: (K_PAD, TOTAL_COLS) bf16; b_slab: (1, TOTAL_COLS) f32."""
    B, d_in = x.shape
    assert d_in <= K_PAD
    tm = B if tm is None else min(tm, B)
    assert B % tm == 0, "batch must be a multiple of the batch tile"

    # Zero-pad the contraction dim so the x tile load is full-lane / unmasked
    # (the padded weight rows are zero, so the result is exact).
    x_pad = jnp.pad(x, ((0, 0), (0, K_PAD - d_in)))

    out_pad = pl.pallas_call(
        resnet_kernel,
        out_shape=jax.ShapeDtypeStruct((B, OUT_PAD), x.dtype),
        grid=(B // tm,),                     # default tm=B -> single grid step
        in_specs=[
            pl.BlockSpec((tm, K_PAD), lambda i: (i, 0)),        # batch-tiled input
            pl.BlockSpec(w_slab.shape, lambda i: (0, 0)),       # resident weight slab
            pl.BlockSpec(b_slab.shape, lambda i: (0, 0)),       # resident bias slab
        ],
        out_specs=pl.BlockSpec((tm, OUT_PAD), lambda i: (i, 0)),
        compiler_params=pltpu.CompilerParams(
            dimension_semantics=("arbitrary",)),
    )(x_pad, w_slab, b_slab)

    return out_pad[:, :OUTPUT_SIZE]


def pack_params(w_in, b_in, block_ws, block_bs, w_out, b_out):
    """Pack all layer params into one bf16 weight slab + one f32 bias slab."""
    H = HIDDEN
    w_slab = jnp.zeros((K_PAD, TOTAL_COLS), jnp.float32)
    b_slab = jnp.zeros((1, TOTAL_COLS), jnp.float32)
    w_slab = w_slab.at[: w_in.shape[0], COL_IN:COL_IN + H].set(w_in)
    b_slab = b_slab.at[:, COL_IN:COL_IN + H].set(b_in)
    for li, (w, b) in enumerate(zip(block_ws, block_bs)):
        off = COL_BLK + li * H
        w_slab = w_slab.at[:H, off:off + H].set(w)
        b_slab = b_slab.at[:, off:off + H].set(b)
    w_slab = w_slab.at[:H, COL_OUT:COL_OUT + w_out.shape[1]].set(w_out)
    b_slab = b_slab.at[:, COL_OUT:COL_OUT + b_out.shape[1]].set(b_out)
    # Only the matmul operands go bf16; bias / elementwise math stays f32.
    return w_slab.astype(jnp.bfloat16), b_slab


def init_linear(key, fan_in, fan_out):
    """PyTorch-style uniform(-1/sqrt(fan_in), 1/sqrt(fan_in)) init; weight
    returned pre-transposed as (fan_in, fan_out), bias as (1, fan_out)."""
    k_w, k_b = jax.random.split(key)
    bound = 1.0 / (fan_in ** 0.5)
    w = jax.random.uniform(k_w, (fan_in, fan_out), jnp.float32, -bound, bound)
    b = jax.random.uniform(k_b, (1, fan_out), jnp.float32, -bound, bound)
    return w, b


def reference_forward(x, w_in, b_in, block_ws, block_bs, w_out, b_out,
                      *, bf16_operands=True):
    """Pure-JAX reference mirroring the PyTorch forward.  With
    bf16_operands=True it mirrors the kernel's bf16-operand / f32-accumulate
    matmuls exactly; with False it is the full-f32 module semantics."""
    cast = (lambda a: a.astype(jnp.bfloat16)) if bf16_operands else (lambda a: a)
    swish = lambda o: o * jax.nn.sigmoid(o)
    h = jnp.dot(cast(x), cast(w_in), preferred_element_type=jnp.float32) + b_in
    for blk in range(N_BLOCKS):
        residual = h
        for j in range(LAYERS_PER_BLOCK):
            li = blk * LAYERS_PER_BLOCK + j
            h = swish(jnp.dot(cast(h), cast(block_ws[li]),
                              preferred_element_type=jnp.float32) + block_bs[li])
        h = residual + h
    return jnp.dot(cast(h), cast(w_out), preferred_element_type=jnp.float32) + b_out


if __name__ == "__main__":
    key = jax.random.PRNGKey(0)
    k_x, k_in, k_out, *k_blocks = jax.random.split(key, 3 + N_BLOCK_LAYERS)

    # Input
    x = jax.random.normal(k_x, (BATCH, INPUT_SIZE), jnp.float32)

    # Input layer: Linear(input_size, layers[0])
    w_in, b_in = init_linear(k_in, INPUT_SIZE, HIDDEN)

    # Residual blocks: for i in range(1, len(layers)-1, 2) -> blocks with units
    # layers[i:i+2]; each block layer is a square Linear(u, u).
    block_ws, block_bs = [], []
    kb = 0
    for i in range(1, len(LAYERS) - 1, 2):
        for u in LAYERS[i:i + LAYERS_PER_BLOCK]:
            w, b = init_linear(k_blocks[kb], u, u)
            block_ws.append(w)
            block_bs.append(b)
            kb += 1

    # Output layer: Linear(layers[-1], output_size)
    w_out, b_out = init_linear(k_out, HIDDEN, OUTPUT_SIZE)

    # Pack into 2 resident operands (plus x) and run the kernel.
    w_slab, b_slab = pack_params(w_in, b_in, block_ws, block_bs, w_out, b_out)
    out = model_resnet_forward(x, w_slab, b_slab)
    out = jax.block_until_ready(out)
    assert out.shape == (BATCH, OUTPUT_SIZE)

    # Tight check vs. a reference that mirrors the kernel math exactly
    # (bf16 matmul operands, f32 accumulation / elementwise).
    ref_mirror = reference_forward(x, w_in, b_in, block_ws, block_bs, w_out, b_out,
                                   bf16_operands=True)
    assert jnp.allclose(out, ref_mirror, atol=1e-3, rtol=1e-3), \
        "mismatch vs bf16-operand JAX reference"

    # Loose sanity check vs. the full-f32 module semantics (bf16 operand cast
    # introduces ~1e-2-scale differences).
    ref_f32 = reference_forward(x, w_in, b_in, block_ws, block_bs, w_out, b_out,
                                bf16_operands=False)
    assert jnp.allclose(out, ref_f32, atol=1e-1, rtol=1e-1), \
        "mismatch vs f32 JAX reference"

    print("KERNEL_OK")
</pallas_src>

<mosaic_0001>
module attributes {stable_mosaic.version = 11 : i64} {
  func.func @resnet_kernel(%arg0: i32, %arg1: memref<256x128xf32, #tpu.memory_space<vmem>>, %arg2: memref<128x288xbf16, #tpu.memory_space<vmem>>, %arg3: memref<1x288xf32, #tpu.memory_space<vmem>>, %arg4: memref<256x128xf32, #tpu.memory_space<vmem>>) attributes {dimension_semantics = [#tpu.dimension_semantics<arbitrary>], iteration_bounds = array<i64: 1>, scalar_prefetch = 0 : i64, scratch_operands = 0 : i64, tpu.core_type = #tpu.core_type<tc>, window_params = [{transform_indices = @transform_0, window_bounds = array<i64: 256, 128>}, {pipeline_mode = #tpu.pipeline_mode<synchronous>, transform_indices = @transform_1, window_bounds = array<i64: 128, 288>}, {pipeline_mode = #tpu.pipeline_mode<synchronous>, transform_indices = @transform_2, window_bounds = array<i64: 1, 288>}, {transform_indices = @transform_3, window_bounds = array<i64: 256, 128>}]} {
    %c0 = arith.constant 0 : index
    %c0_0 = arith.constant 0 : index
    %0 = vector.load %arg1[%c0, %c0_0] : memref<256x128xf32, #tpu.memory_space<vmem>>, vector<256x128xf32>
    %1 = arith.truncf %0 : vector<256x128xf32> to vector<256x128xbf16>
    %c0_1 = arith.constant 0 : index
    %c0_2 = arith.constant 0 : index
    %2 = vector.load %arg2[%c0_1, %c0_2] : memref<128x288xbf16, #tpu.memory_space<vmem>>, vector<128x32xbf16>
    %cst = arith.constant dense<0.000000e+00> : vector<256x32xf32>
    %3 = tpu.matmul %1, %2, %cst {dimension_numbers = #tpu.dot_dimension_numbers<[1], [0], [0], [1], [0, 0, 1, 1], [], []>} : vector<256x128xbf16>, vector<128x32xbf16>, vector<256x32xf32> -> vector<256x32xf32>
    %c0_3 = arith.constant 0 : index
    %c0_4 = arith.constant 0 : index
    %4 = vector.load %arg3[%c0_3, %c0_4] : memref<1x288xf32, #tpu.memory_space<vmem>>, vector<1x32xf32>
    %5 = vector.broadcast %4 : vector<1x32xf32> to vector<256x32xf32>
    %6 = arith.addf %3, %5 : vector<256x32xf32>
    %c0_5 = arith.constant 0 : index
    %c32 = arith.constant 32 : index
    %7 = vector.load %arg2[%c0_5, %c32] : memref<128x288xbf16, #tpu.memory_space<vmem>>, vector<32x32xbf16>
    %c0_6 = arith.constant 0 : index
    %c32_7 = arith.constant 32 : index
    %8 = vector.load %arg3[%c0_6, %c32_7] : memref<1x288xf32, #tpu.memory_space<vmem>>, vector<1x32xf32>
    %9 = arith.truncf %6 : vector<256x32xf32> to vector<256x32xbf16>
    %cst_8 = arith.constant dense<0.000000e+00> : vector<256x32xf32>
    %10 = tpu.matmul %9, %7, %cst_8 {dimension_numbers = #tpu.dot_dimension_numbers<[1], [0], [0], [1], [0, 0, 1, 1], [], []>} : vector<256x32xbf16>, vector<32x32xbf16>, vector<256x32xf32> -> vector<256x32xf32>
    %11 = vector.broadcast %8 : vector<1x32xf32> to vector<256x32xf32>
    %12 = arith.addf %10, %11 : vector<256x32xf32>
    %13 = arith.negf %12 : vector<256x32xf32>
    %14 = math.exp %13 : vector<256x32xf32>
    %cst_9 = arith.constant 1.000000e+00 : f32
    %15 = vector.broadcast %cst_9 : f32 to vector<256x32xf32>
    %16 = arith.addf %15, %14 : vector<256x32xf32>
    %17 = arith.divf %15, %16 : vector<256x32xf32>
    %18 = arith.mulf %12, %17 : vector<256x32xf32>
    %c0_10 = arith.constant 0 : index
    %c64 = arith.constant 64 : index
    %19 = vector.load %arg2[%c0_10, %c64] : memref<128x288xbf16, #tpu.memory_space<vmem>>, vector<32x32xbf16>
    %c0_11 = arith.constant 0 : index
    %c64_12 = arith.constant 64 : index
    %20 = vector.load %arg3[%c0_11, %c64_12] : memref<1x288xf32, #tpu.memory_space<vmem>>, vector<1x32xf32>
    %21 = arith.truncf %18 : vector<256x32xf32> to vector<256x32xbf16>
    %cst_13 = arith.constant dense<0.000000e+00> : vector<256x32xf32>
    %22 = tpu.matmul %21, %19, %cst_13 {dimension_numbers = #tpu.dot_dimension_numbers<[1], [0], [0], [1], [0, 0, 1, 1], [], []>} : vector<256x32xbf16>, vector<32x32xbf16>, vector<256x32xf32> -> vector<256x32xf32>
    %23 = vector.broadcast %20 : vector<1x32xf32> to vector<256x32xf32>
    %24 = arith.addf %22, %23 : vector<256x32xf32>
    %25 = arith.negf %24 : vector<256x32xf32>
    %26 = math.exp %25 : vector<256x32xf32>
    %cst_14 = arith.constant 1.000000e+00 : f32
    %27 = vector.broadcast %cst_14 : f32 to vector<256x32xf32>
    %28 = arith.addf %27, %26 : vector<256x32xf32>
    %29 = arith.divf %27, %28 : vector<256x32xf32>
    %30 = arith.mulf %24, %29 : vector<256x32xf32>
    %31 = arith.addf %6, %30 : vector<256x32xf32>
    %c0_15 = arith.constant 0 : index
    %c96 = arith.constant 96 : index
    %32 = vector.load %arg2[%c0_15, %c96] : memref<128x288xbf16, #tpu.memory_space<vmem>>, vector<32x32xbf16>
    %c0_16 = arith.constant 0 : index
    %c96_17 = arith.constant 96 : index
    %33 = vector.load %arg3[%c0_16, %c96_17] : memref<1x288xf32, #tpu.memory_space<vmem>>, vector<1x32xf32>
    %34 = arith.truncf %31 : vector<256x32xf32> to vector<256x32xbf16>
    %cst_18 = arith.constant dense<0.000000e+00> : vector<256x32xf32>
    %35 = tpu.matmul %34, %32, %cst_18 {dimension_numbers = #tpu.dot_dimension_numbers<[1], [0], [0], [1], [0, 0, 1, 1], [], []>} : vector<256x32xbf16>, vector<32x32xbf16>, vector<256x32xf32> -> vector<256x32xf32>
    %36 = vector.broadcast %33 : vector<1x32xf32> to vector<256x32xf32>
    %37 = arith.addf %35, %36 : vector<256x32xf32>
    %38 = arith.negf %37 : vector<256x32xf32>
    %39 = math.exp %38 : vector<256x32xf32>
    %cst_19 = arith.constant 1.000000e+00 : f32
    %40 = vector.broadcast %cst_19 : f32 to vector<256x32xf32>
    %41 = arith.addf %40, %39 : vector<256x32xf32>
    %42 = arith.divf %40, %41 : vector<256x32xf32>
    %43 = arith.mulf %37, %42 : vector<256x32xf32>
    %c0_20 = arith.constant 0 : index
    %c128 = arith.constant 128 : index
    %44 = vector.load %arg2[%c0_20, %c128] : memref<128x288xbf16, #tpu.memory_space<vmem>>, vector<32x32xbf16>
    %c0_21 = arith.constant 0 : index
    %c128_22 = arith.constant 128 : index
    %45 = vector.load %arg3[%c0_21, %c128_22] : memref<1x288xf32, #tpu.memory_space<vmem>>, vector<1x32xf32>
    %46 = arith.truncf %43 : vector<256x32xf32> to vector<256x32xbf16>
    %cst_23 = arith.constant dense<0.000000e+00> : vector<256x32xf32>
    %47 = tpu.matmul %46, %44, %cst_23 {dimension_numbers = #tpu.dot_dimension_numbers<[1], [0], [0], [1], [0, 0, 1, 1], [], []>} : vector<256x32xbf16>, vector<32x32xbf16>, vector<256x32xf32> -> vector<256x32xf32>
    %48 = vector.broadcast %45 : vector<1x32xf32> to vector<256x32xf32>
    %49 = arith.addf %47, %48 : vector<256x32xf32>
    %50 = arith.negf %49 : vector<256x32xf32>
    %51 = math.exp %50 : vector<256x32xf32>
    %cst_24 = arith.constant 1.000000e+00 : f32
    %52 = vector.broadcast %cst_24 : f32 to vector<256x32xf32>
    %53 = arith.addf %52, %51 : vector<256x32xf32>
    %54 = arith.divf %52, %53 : vector<256x32xf32>
    %55 = arith.mulf %49, %54 : vector<256x32xf32>
    %56 = arith.addf %31, %55 : vector<256x32xf32>
    %c0_25 = arith.constant 0 : index
    %c160 = arith.constant 160 : index
    %57 = vector.load %arg2[%c0_25, %c160] : memref<128x288xbf16, #tpu.memory_space<vmem>>, vector<32x128xbf16>
    %c0_26 = arith.constant 0 : index
    %c160_27 = arith.constant 160 : index
    %58 = vector.load %arg3[%c0_26, %c160_27] : memref<1x288xf32, #tpu.memory_space<vmem>>, vector<1x128xf32>
    %59 = arith.truncf %56 : vector<256x32xf32> to vector<256x32xbf16>
    %cst_28 = arith.constant dense<0.000000e+00> : vector<256x128xf32>
    %60 = tpu.matmul %59, %57, %cst_28 {dimension_numbers = #tpu.dot_dimension_numbers<[1], [0], [0], [1], [0, 0, 1, 1], [], []>} : vector<256x32xbf16>, vector<32x128xbf16>, vector<256x128xf32> -> vector<256x128xf32>
    %61 = vector.broadcast %58 : vector<1x128xf32> to vector<256x128xf32>
    %62 = arith.addf %60, %61 : vector<256x128xf32>
    %c0_29 = arith.constant 0 : index
    %c0_30 = arith.constant 0 : index
    %63 = vector.load %arg4[%c0_29, %c0_30] : memref<256x128xf32, #tpu.memory_space<vmem>>, vector<256x128xf32>
    tpu.vector_store %arg4[%c0_29, %c0_30], %62 {strides = array<i32>} : memref<256x128xf32, #tpu.memory_space<vmem>>, vector<256x128xf32>,
    return
  }
  func.func @transform_0(%arg0: i32) -> (i32, i32) {
    %c0_i32 = arith.constant 0 : i32
    %c0_i32_0 = arith.constant 0 : i32
    return %arg0, %c0_i32 : i32, i32
  }
  func.func @transform_1(%arg0: i32) -> (i32, i32) {
    %c0_i32 = arith.constant 0 : i32
    %c0_i32_0 = arith.constant 0 : i32
    %c0_i32_1 = arith.constant 0 : i32
    return %c0_i32, %c0_i32_0 : i32, i32
  }
  func.func @transform_2(%arg0: i32) -> (i32, i32) {
    %c0_i32 = arith.constant 0 : i32
    %c0_i32_0 = arith.constant 0 : i32
    %c0_i32_1 = arith.constant 0 : i32
    return %c0_i32, %c0_i32_0 : i32, i32
  }
  func.func @transform_3(%arg0: i32) -> (i32, i32) {
    %c0_i32 = arith.constant 0 : i32
    %c0_i32_0 = arith.constant 0 : i32
    return %arg0, %c0_i32 : i32, i32
  }
}

</mosaic_0001>

<bundles_post_ra>
// kernel: tpu_custom_call.1
= control target key start
LH: loop header
LB: loop body
LE: loop exit
PB: predicated region body
PF: predicated region fallthrough
CT: control target
= control target key end

     0   :  { %s3674_s7 = smov 96   ;;  %s4933_s0 = inlined_call_operand.vmem [shape: f32[256,128], index: 0, kind: input, shape index: {}]   ;;  %s4934_s1 = inlined_call_operand.vmem [shape: bf16[128,288], index: 1, kind: input, shape index: {}]   ;;  %s4935_s2 = inlined_call_operand.vmem [shape: f32[1,288], index: 2, kind: input, shape index: {}]   ;;  %s4936_s3 = inlined_call_operand.hbm [shape: f32[256,128], index: 3, kind: output, shape index: {}]  }
   0x1   :  { %v3122_v0 = vld [vmem:[%s4934_s1 + $0xa8] ss:$12 sps:$4 sm:$0xff]   ;;  %v3123_v1 = vld [vmem:[%s4934_s1 + $0x90] ss:$12 sps:$4 sm:$0xff]   ;;  %v3124_v2 = vld [vmem:[%s4934_s1 + $0x78] ss:$12 sps:$4 sm:$0xff]  }
   0x2   :  { %2884 = vmatprep.subr.bf16.mxu0 %v3122_v0  ;;  %v3125_v3 = vld [vmem:[%s4934_s1 + $0x60] ss:$12 sps:$4 sm:$0xff]   ;;  %v3126_v7 = vld [vmem:[%s4934_s1 + $0x48] ss:$12 sps:$4 sm:$0xff]   ;;  %v3127_v8 = vld [vmem:[%s4934_s1 + $0x30] ss:$12 sps:$4 sm:$0xff]  }
   0x3   :  { %2885 = vmatpush3.bf16.msra.mxu0 %v3122_v0  ;;  %v16_v4 = vld [vmem:[%s4933_s0] sm:$0xff]  ;;  %v17_v5 = vld [vmem:[%s4933_s0 + $0x8] sm:$0xff] }
   0x4   :  { %2886 = vmatprep.subr.bf16.mxu0 %v3123_v1  ;;  %v48_v6 = vpack.c.bf16 %v17_v5, %v16_v4  ;;  %v3128_v9 = vld [vmem:[%s4934_s1 + $0x18] ss:$12 sps:$4 sm:$0xff]   ;;  %v3735_v11 = vld [vmem:[%s4934_s1] ss:$12 sps:$4 sm:$0xff]  }
   0x5   :  { %v3730_v10 = vld [vmem:[%s4934_s1 + $0x18] ss:$12 sps:$4 sm:$0xff]  }
   0x6   :  { %2900 = vmatprep.mubr.bf16.mxu0 %v48_v6  ;;  %328 = vrot.lane.b32.xlu0 %v3730_v10, %s3674_s7 }
   0x7   :  { %2887 = vmatpush3.bf16.msra.mxu0 %v3123_v1 }
   0x8   :  { %2888 = vmatprep.subr.bf16.mxu0 %v3124_v2 }
   0xb   :  { %2889 = vmatpush3.bf16.msra.mxu0 %v3124_v2 }
   0xc   :  { %2890 = vmatprep.subr.bf16.mxu0 %v3125_v3 }
   0xf   :  { %2891 = vmatpush3.bf16.msra.mxu0 %v3125_v3 }
  0x10   :  { %2892 = vmatprep.subr.bf16.mxu0 %v3126_v7 }
  0x13   :  { %2893 = vmatpush3.bf16.msra.mxu0 %v3126_v7 }
  0x14   :  { %2894 = vmatprep.subr.bf16.mxu0 %v3127_v8 }
  0x17   :  { %2895 = vmatpush3.bf16.msra.mxu0 %v3127_v8 }
  0x18   :  { %8 = vsyncpa [#allocation3], 0  ;;  %2896 = vmatprep.subr.bf16.mxu0 %v3128_v9  ;;  %v3129_v12 = vld [vmem:[%s4934_s1] ss:$12 sps:$4 sm:$0xff]   ;;  %326 = vrot.lane.b32.xlu0 %v3735_v11, %s3674_s7  ;;  %v18_v13 = vld [vmem:[%s4933_s0 + $0x10] sm:$0xff]  ;;  %s3675_s20 = smov 64  }
  0x19   :  { %v19_v14 = vld [vmem:[%s4933_s0 + $0x18] sm:$0xff]  ;;  %v20_v15 = vld [vmem:[%s4933_s0 + $0x20] sm:$0xff]  ;;  %v21_v16 = vld [vmem:[%s4933_s0 + $0x28] sm:$0xff]  ;;  %vm335_vm0 = vcmask 261120   ;;  %vm2275_vm1 = vcmask 785408  }
  0x1a   :  { %v49_v17 = vpack.c.bf16 %v19_v14, %v18_v13  ;;  %v50_v18 = vpack.c.bf16 %v21_v16, %v20_v15  ;;  %v22_v19 = vld [vmem:[%s4933_s0 + $0x30] sm:$0xff]  ;;  %v23_v20 = vld [vmem:[%s4933_s0 + $0x38] sm:$0xff]  ;;  %v24_v21 = vld [vmem:[%s4933_s0 + $0x40] sm:$0xff] }
  0x1b   :  { %2897 = vmatpush3.bf16.msra.mxu0 %v3128_v9  ;;  %v25_v22 = vld [vmem:[%s4933_s0 + $0x48] sm:$0xff]  ;;  %v51_v23 = vpack.c.bf16 %v23_v20, %v22_v19  ;;  %v26_v25 = vld [vmem:[%s4933_s0 + $0x50] sm:$0xff]  ;;  %v27_v26 = vld [vmem:[%s4933_s0 + $0x58] sm:$0xff] }
  0x1c   :  { %2898 = vmatprep.subr.bf16.mxu0 %v3129_v12  ;;  %v52_v24 = vpack.c.bf16 %v25_v22, %v24_v21  ;;  %v28_v27 = vld [vmem:[%s4933_s0 + $0x60] sm:$0xff]  ;;  %v29_v28 = vld [vmem:[%s4933_s0 + $0x68] sm:$0xff]  ;;  %v53_v29 = vpack.c.bf16 %v27_v26, %v26_v25  ;;  %v30_v31 = vld [vmem:[%s4933_s0 + $0x70] sm:$0xff]  ;;  %785 = vrot.lane.b32.xlu0 %v3735_v11, %s3675_s20 }
  0x1d   :  { %v54_v30 = vpack.c.bf16 %v29_v28, %v28_v27  ;;  %v31_v32 = vld [vmem:[%s4933_s0 + $0x78] sm:$0xff]  ;;  %v32_v33 = vld [vmem:[%s4933_s0 + $0x80] sm:$0xff]  ;;  %v33_v34 = vld [vmem:[%s4933_s0 + $0x88] sm:$0xff] }
  0x1e   :  { %v55_v35 = vpack.c.bf16 %v31_v32, %v30_v31  ;;  %v56_v36 = vpack.c.bf16 %v33_v34, %v32_v33  ;;  %v34_v37 = vld [vmem:[%s4933_s0 + $0x90] sm:$0xff]  ;;  %v35_v38 = vld [vmem:[%s4933_s0 + $0x98] sm:$0xff]  ;;  %v36_v39 = vld [vmem:[%s4933_s0 + $0xa0] sm:$0xff] }
  0x1f   :  { %2899 = vmatpush3.bf16.msra.mxu0 %v3129_v12  ;;  %v37_v40 = vld [vmem:[%s4933_s0 + $0xa8] sm:$0xff]  ;;  %v57_v41 = vpack.c.bf16 %v35_v38, %v34_v37  ;;  %v38_v43 = vld [vmem:[%s4933_s0 + $0xb0] sm:$0xff]  ;;  %v39_v44 = vld [vmem:[%s4933_s0 + $0xb8] sm:$0xff] }
  0x20   :  { %v58_v42 = vpack.c.bf16 %v37_v40, %v36_v39  ;;  %v40_v45 = vld [vmem:[%s4933_s0 + $0xc0] sm:$0xff]  ;;  %v41_v46 = vld [vmem:[%s4933_s0 + $0xc8] sm:$0xff]  ;;  %v59_v47 = vpack.c.bf16 %v39_v44, %v38_v43  ;;  %v42_v49 = vld [vmem:[%s4933_s0 + $0xd0] sm:$0xff] }
  0x21   :  { %v60_v48 = vpack.c.bf16 %v41_v46, %v40_v45  ;;  %v43_v50 = vld [vmem:[%s4933_s0 + $0xd8] sm:$0xff]  ;;  %v44_v51 = vld [vmem:[%s4933_s0 + $0xe0] sm:$0xff]  ;;  %v45_v52 = vld [vmem:[%s4933_s0 + $0xe8] sm:$0xff] }
  0x22   :  { %2901 = vmatmul.mubr.bf16.vlgmr.msra.gmra.mxu0 %v49_v17  ;;  %v61_v53 = vpack.c.bf16 %v43_v50, %v42_v49  ;;  %v62_v54 = vpack.c.bf16 %v45_v52, %v44_v51  ;;  %v46_v55 = vld [vmem:[%s4933_s0 + $0xf0] sm:$0xff]  ;;  %v47_v56 = vld [vmem:[%s4933_s0 + $0xf8] sm:$0xff]  ;;  %v3837_v58 = vld [vmem:[%s4935_s2] ss:$0 sm:$0xff]  ;;  %s3676_s0 = smov 32  }
  0x23   :  { %2904 = vmatprep.mubr.bf16.mxu0 %v50_v18  ;;  %v63_v57 = vpack.c.bf16 %v47_v56, %v46_v55  ;;  %332 = vrot.lane.b32.xlu1 %v3837_v58, %s3674_s7 }
  0x24   :  { %1277 = vrot.lane.b32.xlu0 %v3730_v10, %s3676_s0 }
  0x27   :  { %787 = vrot.lane.b32.xlu1 %v3730_v10, %s3675_s20 }
  0x28   :  { %1281 = vrot.lane.b32.xlu0 %v3837_v58, %s3676_s0 }
  0x2a   :  { %2905 = vmatmul.mubr.bf16.gmra.mxu0 %v51_v23 }
  0x2b   :  { %2908 = vmatprep.mubr.bf16.mxu0 %v52_v24  ;;  %791 = vrot.lane.b32.xlu1 %v3837_v58, %s3675_s20 }
  0x2f   :  { %1275 = vrot.lane.b32.xlu1 %v3735_v11, %s3676_s0 }
  0x32   :  { %2909 = vmatmul.mubr.bf16.gmra.mxu0 %v53_v29 }
  0x33   :  { %2912 = vmatprep.mubr.bf16.mxu0 %v54_v30 }
  0x3a   :  { %2913 = vmatmul.mubr.bf16.gmra.mxu0 %v55_v35 }
  0x3b   :  { %2916 = vmatprep.mubr.bf16.mxu0 %v56_v36 }
  0x42   :  { %2917 = vmatmul.mubr.bf16.gmra.mxu0 %v57_v41 }
  0x43   :  { %2920 = vmatprep.mubr.bf16.mxu0 %v58_v42 }
  0x4a   :  { %2921 = vmatmul.mubr.bf16.gmra.mxu0 %v59_v47 }
  0x4b   :  { %2924 = vmatprep.mubr.bf16.mxu0 %v60_v48 }
  0x52   :  { %2925 = vmatmul.mubr.bf16.gmra.mxu0 %v61_v53 }
  0x53   :  { %2928 = vmatprep.mubr.bf16.mxu0 %v62_v54 }
  0x5a   :  { %2929 = vmatmul.mubr.bf16.gmra.mxu0 %v63_v57 }
  0x78   :  { %v329_v59 = vpop.permute.xlu0 %328 }
  0x79   :  { %2932 = vmatprep.subr.bf16.mxu1 %v329_v59 }
  0x7a   :  { %2933 = vmatpush3.bf16.msra.mxu1 %v329_v59 }
  0x8a   :  { %v327_v60 = vpop.permute.xlu0 %326 }
  0x8b   :  { %2934 = vmatprep.subr.bf16.mxu1 %v327_v60 }
  0x8c   :  { %2935 = vmatpush3.bf16.msra.mxu1 %v327_v60 }
  0xe2   :  { %v2902_v61 = vpop.f32.mrf.mxu0 }
  0xe3   :  { %v3854_v4 = vadd.f32 %v2902_v61, %v3837_v58 }
  0xe4   :  { %v169_v62 = vpop.f32.mrf.mxu0 }
  0xe5   :  { %v3848_v2 = vadd.f32 %v3837_v58, %v169_v62  ;;  %v3951_v62 = vpop.permute.xlu1 %332 }
  0xe6   :  { %v2903_v63 = vpop.f32.mrf.mxu0 }
  0xe7   :  { %v3845_v0 = vadd.f32 %v2903_v63, %v3837_v58 }
  0xe8   :  { %v172_v1 = vpop.f32.mrf.mxu0 }
  0xe9   :  { %v3851_v3 = vadd.f32 %v3837_v58, %v172_v1  ;;  %v301_v7 = vpack.c.bf16 %v3845_v0, %v3854_v4 }
  0xea   :  { %v2906_v5 = vpop.f32.mrf.mxu0 }
  0xeb   :  { %v300_v6 = vpack.c.bf16 %v3851_v3, %v3848_v2  ;;  %v3872_v16 = vadd.f32 %v2906_v5, %v3837_v58 }
  0xec   :  { %v185_v8 = vpop.f32.mrf.mxu0 }
  0xed   :  { %2936 = vmatprep.mubr.msk.bf16.mxu1 %vm335_vm0, %v300_v6  ;;  %v3866_v14 = vadd.f32 %v3837_v58, %v185_v8  ;;  %v788_v8 = vpop.permute.xlu1 %787 }
  0xee   :  { %v2907_v9 = vpop.f32.mrf.mxu0  ;;  %2937 = vmatmul.mubr.msk.bf16.vlgmr.msra.gmra.mxu1 %vm335_vm0, %v301_v7  ;;  %2968 = vmatprep.subr.bf16.mxu1 %v788_v8 }
  0xef   :  { %v3863_v12 = vadd.f32 %v2907_v9, %v3837_v58  ;;  %2969 = vmatpush3.bf16.msra.mxu1 %v788_v8 }
  0xf0   :  { %v188_v13 = vpop.f32.mrf.mxu0 }
  0xf1   :  { %v3869_v15 = vadd.f32 %v3837_v58, %v188_v13  ;;  %v303_v19 = vpack.c.bf16 %v3863_v12, %v3872_v16 }
  0xf2   :  { %v2910_v17 = vpop.f32.mrf.mxu0 }
  0xf3   :  { %v302_v18 = vpack.c.bf16 %v3869_v15, %v3866_v14  ;;  %v3890_v26 = vadd.f32 %v2910_v17, %v3837_v58 }
  0xf4   :  { %v201_v20 = vpop.f32.mrf.mxu0 }
  0xf5   :  { %2940 = vmatprep.mubr.msk.bf16.mxu1 %vm335_vm0, %v302_v18  ;;  %v3884_v24 = vadd.f32 %v3837_v58, %v201_v20 }
  0xf6   :  { %v2911_v21 = vpop.f32.mrf.mxu0  ;;  %2941 = vmatmul.mubr.msk.bf16.gmra.mxu1 %vm335_vm0, %v303_v19 }
  0xf7   :  { %v3881_v22 = vadd.f32 %v2911_v21, %v3837_v58 }
  0xf8   :  { %v204_v23 = vpop.f32.mrf.mxu0 }
  0xf9   :  { %v3887_v25 = vadd.f32 %v3837_v58, %v204_v23  ;;  %v305_v29 = vpack.c.bf16 %v3881_v22, %v3890_v26 }
  0xfa   :  { %v2914_v27 = vpop.f32.mrf.mxu0 }
  0xfb   :  { %v304_v28 = vpack.c.bf16 %v3887_v25, %v3884_v24  ;;  %v3908_v36 = vadd.f32 %v2914_v27, %v3837_v58 }
  0xfc   :  { %v217_v30 = vpop.f32.mrf.mxu0 }
  0xfd   :  { %2944 = vmatprep.mubr.msk.bf16.mxu1 %vm335_vm0, %v304_v28  ;;  %v3902_v34 = vadd.f32 %v3837_v58, %v217_v30 }
  0xfe   :  { %v2915_v31 = vpop.f32.mrf.mxu0  ;;  %2945 = vmatmul.mubr.msk.bf16.gmra.mxu1 %vm335_vm0, %v305_v29 }
  0xff   :  { %v3899_v32 = vadd.f32 %v2915_v31, %v3837_v58 }
 0x100   :  { %v220_v33 = vpop.f32.mrf.mxu0 }
 0x101   :  { %v3905_v35 = vadd.f32 %v3837_v58, %v220_v33  ;;  %v307_v39 = vpack.c.bf16 %v3899_v32, %v3908_v36  ;;  %v786_v33 = vpop.permute.xlu0 %785 }
 0x102   :  { %v2918_v37 = vpop.f32.mrf.mxu0  ;;  %2970 = vmatprep.subr.bf16.mxu1 %v786_v33 }
 0x103   :  { %v306_v38 = vpack.c.bf16 %v3905_v35, %v3902_v34  ;;  %v3926_v46 = vadd.f32 %v2918_v37, %v3837_v58  ;;  %2971 = vmatpush3.bf16.msra.mxu1 %v786_v33 }
 0x104   :  { %v233_v40 = vpop.f32.mrf.mxu0 }
 0x105   :  { %2948 = vmatprep.mubr.msk.bf16.mxu1 %vm335_vm0, %v306_v38  ;;  %v3920_v44 = vadd.f32 %v3837_v58, %v233_v40 }
 0x106   :  { %v2919_v41 = vpop.f32.mrf.mxu0  ;;  %2949 = vmatmul.mubr.msk.bf16.gmra.mxu1 %vm335_vm0, %v307_v39 }
 0x107   :  { %v3917_v42 = vadd.f32 %v2919_v41, %v3837_v58 }
 0x108   :  { %v236_v43 = vpop.f32.mrf.mxu0 }
 0x109   :  { %v3923_v45 = vadd.f32 %v3837_v58, %v236_v43  ;;  %v309_v49 = vpack.c.bf16 %v3917_v42, %v3926_v46 }
 0x10a   :  { %v2922_v47 = vpop.f32.mrf.mxu0 }
 0x10b   :  { %v308_v48 = vpack.c.bf16 %v3923_v45, %v3920_v44  ;;  %v3944_v56 = vadd.f32 %v2922_v47, %v3837_v58 }
 0x10c   :  { %v249_v50 = vpop.f32.mrf.mxu0 }
 0x10d   :  { %2952 = vmatprep.mubr.msk.bf16.mxu1 %vm335_vm0, %v308_v48  ;;  %v3938_v54 = vadd.f32 %v3837_v58, %v249_v50  ;;  %4953 = vst [vmem:[#allocation5_spill] sm:$0xff] %v3944_v56 }
 0x10e   :  { %v2923_v51 = vpop.f32.mrf.mxu0  ;;  %2953 = vmatmul.mubr.msk.bf16.gmra.mxu1 %vm335_vm0, %v309_v49 }
 0x10f   :  { %v3935_v52 = vadd.f32 %v2923_v51, %v3837_v58 }
 0x110   :  { %v252_v53 = vpop.f32.mrf.mxu0 }
 0x111   :  { %v3941_v55 = vadd.f32 %v3837_v58, %v252_v53  ;;  %v311_v60 = vpack.c.bf16 %v3935_v52, %v3944_v56 }
 0x112   :  { %v2926_v57 = vpop.f32.mrf.mxu0 }
 0x113   :  { %v310_v59 = vpack.c.bf16 %v3941_v55, %v3938_v54  ;;  %v3964_v9 = vadd.f32 %v2926_v57, %v3837_v58 }
 0x114   :  { %v265_v61 = vpop.f32.mrf.mxu0 }
 0x115   :  { %2956 = vmatprep.mubr.msk.bf16.mxu1 %vm335_vm0, %v310_v59  ;;  %v3958_v6 = vadd.f32 %v3837_v58, %v265_v61  ;;  %4957 = vst [vmem:[#allocation9_spill] sm:$0xff] %v3964_v9 }
 0x116   :  { %v2927_v63 = vpop.f32.mrf.mxu0  ;;  %2957 = vmatmul.mubr.msk.bf16.gmra.mxu1 %vm335_vm0, %v311_v60 }
 0x117   :  { %v3955_v1 = vadd.f32 %v2927_v63, %v3837_v58  ;;  %4955 = vst [vmem:[#allocation7_spill] sm:$0xff] %v3958_v6 }
 0x118   :  { %v268_v5 = vpop.f32.mrf.mxu0 }
 0x119   :  { %4954 = vst [vmem:[#allocation6_spill] sm:$0xff] %v3955_v1  ;;  %v3961_v7 = vadd.f32 %v3837_v58, %v268_v5  ;;  %v313_v18 = vpack.c.bf16 %v3955_v1, %v3964_v9 }
 0x11a   :  { %v2930_v13 = vpop.f32.mrf.mxu0 }
 0x11b   :  { %4956 = vst [vmem:[#allocation8_spill] sm:$0xff] %v3961_v7  ;;  %v312_v17 = vpack.c.bf16 %v3961_v7, %v3958_v6  ;;  %v3982_v29 = vadd.f32 %v2930_v13, %v3837_v58 }
 0x11c   :  { %v281_v19 = vpop.f32.mrf.mxu0 }
 0x11d   :  { %2960 = vmatprep.mubr.msk.bf16.mxu1 %vm335_vm0, %v312_v17  ;;  %v3976_v27 = vadd.f32 %v3837_v58, %v281_v19  ;;  %4961 = vst [vmem:[#allocation13_spill] sm:$0xff] %v3982_v29 }
 0x11e   :  { %v2931_v20 = vpop.f32.mrf.mxu0  ;;  %2961 = vmatmul.mubr.msk.bf16.gmra.mxu1 %vm335_vm0, %v313_v18 }
 0x11f   :  { %v3973_v21 = vadd.f32 %v2931_v20, %v3837_v58  ;;  %4959 = vst [vmem:[#allocation11_spill] sm:$0xff] %v3976_v27 }
 0x120   :  { %v284_v23 = vpop.f32.mrf.mxu0 }
 0x121   :  { %4958 = vst [vmem:[#allocation10_spill] sm:$0xff] %v3973_v21  ;;  %v3979_v28 = vadd.f32 %v3837_v58, %v284_v23  ;;  %v315_v31 = vpack.c.bf16 %v3973_v21, %v3982_v29 }
 0x123   :  { %4960 = vst [vmem:[#allocation12_spill] sm:$0xff] %v3979_v28  ;;  %v314_v30 = vpack.c.bf16 %v3979_v28, %v3976_v27 }
 0x125   :  { %2964 = vmatprep.mubr.msk.bf16.mxu1 %vm335_vm0, %v314_v30 }
 0x126   :  { %2965 = vmatmul.mubr.msk.bf16.gmra.mxu1 %vm335_vm0, %v315_v31 }
 0x1ae   :  { %v2938_v37 = vpop.f32.mrf.mxu1 }
 0x1af   :  { %v3994_v38 = vadd.f32 %v2938_v37, %v3951_v62 }
 0x1b0   :  { %v418_v39 = vpop.f32.mrf.mxu1 }
 0x1b1   :  { %v2573_v40 = vmul.f32 -1.442695, %v3994_v38  ;;  %v3998_v41 = vadd.f32 %v418_v39, %v3951_v62 }
 0x1b2   :  { %v2939_v43 = vpop.f32.mrf.mxu1 }
 0x1b3   :  { %3140 = vpow2.f32 %v2573_v40  ;;  %v2571_v47 = vmul.f32 -1.442695, %v3998_v41  ;;  %v4002_v10 = vadd.f32 %v2939_v43, %v3951_v62 }
 0x1b4   :  { %v421_v11 = vpop.f32.mrf.mxu1 }
 0x1b5   :  { %3142 = vpow2.f32 %v2571_v47  ;;  %v2574_v58 = vmul.f32 -1.442695, %v4002_v10  ;;  %v4006_v48 = vadd.f32 %v421_v11, %v3951_v62 }
 0x1b6   :  { %v2942_v49 = vpop.f32.mrf.mxu1 }
 0x1b7   :  { %3144 = vpow2.f32 %v2574_v58  ;;  %v2572_v50 = vmul.f32 -1.442695, %v4006_v48  ;;  %v4010_v51 = vadd.f32 %v2942_v49, %v3951_v62 }
 0x1b8   :  { %v434_v53 = vpop.f32.mrf.mxu1 }
 0x1b9   :  { %3146 = vpow2.f32 %v2572_v50  ;;  %v2577_v57 = vmul.f32 -1.442695, %v4010_v51  ;;  %v4014_v59 = vadd.f32 %v434_v53, %v3951_v62 }
 0x1ba   :  { %v2943_v60 = vpop.f32.mrf.mxu1 }
 0x1bb   :  { %3148 = vpow2.f32 %v2577_v57  ;;  %v2575_v61 = vmul.f32 -1.442695, %v4014_v59  ;;  %v4018_v63 = vadd.f32 %v2943_v60, %v3951_v62 }
 0x1bc   :  { %v437_v5 = vpop.f32.mrf.mxu1 }
 0x1bd   :  { %3150 = vpow2.f32 %v2575_v61  ;;  %v2578_v8 = vmul.f32 -1.442695, %v4018_v63  ;;  %v4022_v13 = vadd.f32 %v437_v5, %v3951_v62 }
 0x1be   :  { %v2946_v17 = vpop.f32.mrf.mxu1 }
 0x1bf   :  { %3152 = vpow2.f32 %v2578_v8  ;;  %v2576_v18 = vmul.f32 -1.442695, %v4022_v13  ;;  %v4026_v19 = vadd.f32 %v2946_v17, %v3951_v62 }
 0x1c0   :  { %v3141_v20 = vpop.eup %3140  ;;  %v450_v23 = vpop.f32.mrf.mxu1 }
 0x1c1   :  { %v643_v30 = vadd.f32 1.0, %v3141_v20  ;;  %3154 = vpow2.f32 %v2576_v18  ;;  %v2581_v31 = vmul.f32 -1.442695, %v4026_v19  ;;  %v4030_v33 = vadd.f32 %v450_v23, %v3951_v62 }
 0x1c2   :  { %v3143_v37 = vpop.eup %3142  ;;  %v2947_v39 = vpop.f32.mrf.mxu1 }
 0x1c3   :  { %3156 = vrcp.f32 %v643_v30  ;;  %v641_v40 = vadd.f32 1.0, %v3143_v37  ;;  %v2579_v43 = vmul.f32 -1.442695, %v4030_v33  ;;  %v4034_v47 = vadd.f32 %v2947_v39, %v3951_v62 }
 0x1c4   :  { %v3145_v11 = vpop.eup %3144  ;;  %3158 = vpow2.f32 %v2581_v31  ;;  %v453_v58 = vpop.f32.mrf.mxu1 }
 0x1c5   :  { %3160 = vrcp.f32 %v641_v40  ;;  %v644_v49 = vadd.f32 1.0, %v3145_v11  ;;  %v2582_v50 = vmul.f32 -1.442695, %v4034_v47  ;;  %v4038_v53 = vadd.f32 %v453_v58, %v3951_v62 }
 0x1c6   :  { %v3147_v57 = vpop.eup %3146  ;;  %3162 = vpow2.f32 %v2579_v43  ;;  %v2950_v60 = vpop.f32.mrf.mxu1 }
 0x1c7   :  { %3164 = vrcp.f32 %v644_v49  ;;  %v642_v61 = vadd.f32 1.0, %v3147_v57  ;;  %v2580_v5 = vmul.f32 -1.442695, %v4038_v53  ;;  %v4042_v8 = vadd.f32 %v2950_v60, %v3951_v62 }
 0x1c8   :  { %v3149_v17 = vpop.eup %3148  ;;  %3166 = vpow2.f32 %v2582_v50  ;;  %v466_v18 = vpop.f32.mrf.mxu1 }
 0x1c9   :  { %3168 = vrcp.f32 %v642_v61  ;;  %v647_v20 = vadd.f32 1.0, %v3149_v17  ;;  %v2585_v23 = vmul.f32 -1.442695, %v4042_v8  ;;  %v4046_v30 = vadd.f32 %v466_v18, %v3951_v62 }
 0x1ca   :  { %v3151_v31 = vpop.eup %3150  ;;  %3170 = vpow2.f32 %v2580_v5  ;;  %v2951_v37 = vpop.f32.mrf.mxu1 }
 0x1cb   :  { %3172 = vrcp.f32 %v647_v20  ;;  %v645_v39 = vadd.f32 1.0, %v3151_v31  ;;  %v2583_v40 = vmul.f32 -1.442695, %v4046_v30  ;;  %v4050_v43 = vadd.f32 %v2951_v37, %v3951_v62 }
 0x1cc   :  { %v3153_v11 = vpop.eup %3152  ;;  %3174 = vpow2.f32 %v2585_v23  ;;  %v469_v58 = vpop.f32.mrf.mxu1 }
 0x1cd   :  { %3176 = vrcp.f32 %v645_v39  ;;  %v648_v49 = vadd.f32 1.0, %v3153_v11  ;;  %v2586_v50 = vmul.f32 -1.442695, %v4050_v43  ;;  %v4054_v57 = vadd.f32 %v469_v58, %v3951_v62 }
 0x1ce   :  { %v3155_v60 = vpop.eup %3154  ;;  %3178 = vpow2.f32 %v2583_v40  ;;  %v2954_v61 = vpop.f32.mrf.mxu1 }
 0x1cf   :  { %3180 = vrcp.f32 %v648_v49  ;;  %v646_v5 = vadd.f32 1.0, %v3155_v60  ;;  %v2584_v17 = vmul.f32 -1.442695, %v4054_v57  ;;  %v4058_v18 = vadd.f32 %v2954_v61, %v3951_v62 }
 0x1d0   :  { %v3157_v20 = vpop.eup %3156  ;;  %3182 = vpow2.f32 %v2586_v50  ;;  %v482_v23 = vpop.f32.mrf.mxu1 }
 0x1d1   :  { %v3159_v31 = vpop.eup %3158  ;;  %3184 = vrcp.f32 %v646_v5  ;;  %v2589_v37 = vmul.f32 -1.442695, %v4058_v18  ;;  %v4062_v39 = vadd.f32 %v482_v23, %v3951_v62  ;;  %v739_v7 = vmul.f32 %v3157_v20, %v3994_v38 }
 0x1d2   :  { %v3161_v11 = vpop.eup %3160  ;;  %v651_v40 = vadd.f32 1.0, %v3159_v31  ;;  %3186 = vpow2.f32 %v2584_v17  ;;  %v2955_v58 = vpop.f32.mrf.mxu1 }
 0x1d3   :  { %v3163_v49 = vpop.eup %3162  ;;  %3188 = vpow2.f32 %v2589_v37  ;;  %v2587_v60 = vmul.f32 -1.442695, %v4062_v39  ;;  %v4066_v61 = vadd.f32 %v2955_v58, %v3951_v62  ;;  %v737_v58 = vmul.f32 %v3161_v11, %v3998_v41 }
 0x1d4   :  { %v3165_v50 = vpop.eup %3164  ;;  %3190 = vrcp.f32 %v651_v40  ;;  %v649_v29 = vadd.f32 1.0, %v3163_v49  ;;  %v485_v5 = vpop.f32.mrf.mxu1 }
 0x1d5   :  { %v3167_v28 = vpop.eup %3166  ;;  %3192 = vpow2.f32 %v2587_v60  ;;  %v2590_v23 = vmul.f32 -1.442695, %v4066_v61  ;;  %v4070_v27 = vadd.f32 %v485_v5, %v3951_v62  ;;  %v740_v31 = vmul.f32 %v3165_v50, %v4002_v10 }
 0x1d6   :  { %v3169_v17 = vpop.eup %3168  ;;  %3194 = vrcp.f32 %v649_v29  ;;  %v652_v37 = vadd.f32 1.0, %v3167_v28  ;;  %v2958_v21 = vpop.f32.mrf.mxu1 }
 0x1d7   :  { %v3171_v9 = vpop.eup %3170  ;;  %v738_v40 = vmul.f32 %v3169_v17, %v4006_v48  ;;  %3196 = vpow2.f32 %v2590_v23  ;;  %v2588_v49 = vmul.f32 -1.442695, %v4070_v27  ;;  %v4078_v6 = vadd.f32 %v2958_v21, %v3951_v62 }
 0x1d8   :  { %v3173_v60 = vpop.eup %3172  ;;  %3198 = vrcp.f32 %v652_v37  ;;  %v650_v5 = vadd.f32 1.0, %v3171_v9  ;;  %v498_v10 = vpop.f32.mrf.mxu1  ;;  %v770_v48 = vpack.c.bf16 %v740_v31, %v739_v7 }
 0x1d9   :  { %v3175_v29 = vpop.eup %3174  ;;  %v769_v28 = vpack.c.bf16 %v738_v40, %v737_v58  ;;  %3200 = vpow2.f32 %v2588_v49  ;;  %v4081_v50 = vadd.f32 %v498_v10, %v3951_v62  ;;  %v2593_v23 = vmul.f32 -1.442695, %v4078_v6 }
 0x1da   :  { %v3177_v41 = vpop.eup %3176  ;;  %3202 = vrcp.f32 %v650_v5  ;;  %v655_v11 = vadd.f32 1.0, %v3175_v29  ;;  %v2959_v17 = vpop.f32.mrf.mxu1 }
 0x1db   :  { %v3179_v38 = vpop.eup %3178  ;;  %v2591_v9 = vmul.f32 -1.442695, %v4081_v50  ;;  %v4086_v21 = vadd.f32 %v2959_v17, %v3951_v62  ;;  %2972 = vmatprep.mubr.msk.bf16.mxu1 %vm335_vm0, %v769_v28  ;;  %v741_v17 = vmul.f32 %v3177_v41, %v4014_v59 }
 0x1dc   :  { %v3181_v20 = vpop.eup %3180  ;;  %3204 = vrcp.f32 %v655_v11  ;;  %v653_v37 = vadd.f32 1.0, %v3179_v38  ;;  %v501_v58 = vpop.f32.mrf.mxu1  ;;  %2973 = vmatmul.mubr.msk.bf16.vlgmr.msra.gmra.mxu1 %vm335_vm0, %v770_v48  ;;  %v743_v11 = vmul.f32 %v3173_v60, %v4010_v51 }
 0x1dd   :  { %v3183_v7 = vpop.eup %3182  ;;  %3206 = vpow2.f32 %v2593_v23  ;;  %v2594_v31 = vmul.f32 -1.442695, %v4086_v21  ;;  %v4092_v40 = vadd.f32 %v501_v58, %v3951_v62  ;;  %v744_v5 = vmul.f32 %v3181_v20, %v4018_v63 }
 0x1de   :  { %v3185_v49 = vpop.eup %3184  ;;  %3208 = vrcp.f32 %v653_v37  ;;  %v656_v10 = vadd.f32 1.0, %v3183_v7  ;;  %v2962_v29 = vpop.f32.mrf.mxu1 }
 0x1df   :  { %v3187_v28 = vpop.eup %3186  ;;  %v742_v48 = vmul.f32 %v3185_v49, %v4022_v13  ;;  %3210 = vpow2.f32 %v2591_v9  ;;  %v2592_v58 = vmul.f32 -1.442695, %v4092_v40  ;;  %v4100_v1 = vadd.f32 %v2962_v29, %v3951_v62 }
 0x1e0   :  { %v3189_v23 = vpop.eup %3188  ;;  %3212 = vrcp.f32 %v656_v10  ;;  %v654_v38 = vadd.f32 1.0, %v3187_v28  ;;  %v514_v63 = vpop.f32.mrf.mxu1  ;;  %v772_v60 = vpack.c.bf16 %v744_v5, %v743_v11 }
 0x1e1   :  { %v3191_v20 = vpop.eup %3190  ;;  %v771_v37 = vpack.c.bf16 %v742_v48, %v741_v17  ;;  %v659_v7 = vadd.f32 1.0, %v3189_v23  ;;  %3214 = vpow2.f32 %v2594_v31  ;;  %v4103_v51 = vadd.f32 %v514_v63, %v3951_v62 }
 0x1e2   :  { %v3193_v59 = vpop.eup %3192  ;;  %3216 = vrcp.f32 %v654_v38  ;;  %v2597_v13 = vmul.f32 -1.442695, %v4100_v1  ;;  %v2963_v41 = vpop.f32.mrf.mxu1 }
 0x1e3   :  { %v3195_v9 = vpop.eup %3194  ;;  %3218 = vrcp.f32 %v659_v7  ;;  %v657_v49 = vadd.f32 1.0, %v3193_v59  ;;  %v4107_v10 = vadd.f32 %v2963_v41, %v3951_v62  ;;  %2976 = vmatprep.mubr.msk.bf16.mxu1 %vm335_vm0, %v771_v37  ;;  %v2595_v31 = vmul.f32 -1.442695, %v4103_v51 }
 0x1e4   :  { %v3197_v29 = vpop.eup %3196  ;;  %3220 = vpow2.f32 %v2592_v58  ;;  %v517_v28 = vpop.f32.mrf.mxu1  ;;  %2977 = vmatmul.mubr.msk.bf16.gmra.mxu1 %vm335_vm0, %v772_v60  ;;  %v745_v60 = vmul.f32 %v3195_v9, %v4030_v33 }
 0x1e5   :  { %v3199_v5 = vpop.eup %3198  ;;  %3222 = vrcp.f32 %v657_v49  ;;  %v660_v11 = vadd.f32 1.0, %v3197_v29  ;;  %v4113_v17 = vadd.f32 %v517_v28, %v3951_v62  ;;  %v2598_v38 = vmul.f32 -1.442695, %v4107_v10 }
 0x1e6   :  { %v3201_v48 = vpop.eup %3200  ;;  %v748_v23 = vmul.f32 %v3199_v5, %v4034_v47  ;;  %3224 = vpow2.f32 %v2597_v13  ;;  %v2966_v63 = vpop.f32.mrf.mxu1  ;;  %v747_v47 = vmul.f32 %v3191_v20, %v4026_v19 }
 0x1e7   :  { %v3203_v37 = vpop.eup %3202  ;;  %3226 = vrcp.f32 %v660_v11  ;;  %v658_v58 = vadd.f32 1.0, %v3201_v48  ;;  %v2596_v7 = vmul.f32 -1.442695, %v4113_v17  ;;  %v4119_v59 = vadd.f32 %v2966_v63, %v3951_v62 }
 0x1e8   :  { %v746_v41 = vmul.f32 %v3203_v37, %v4038_v53  ;;  %3228 = vpow2.f32 %v2595_v31  ;;  %v530_v49 = vpop.f32.mrf.mxu1  ;;  %v774_v56 = vpack.c.bf16 %v748_v23, %v747_v47 }
 0x1e9   :  { %v3205_v29 = vpop.eup %3204  ;;  %3230 = vrcp.f32 %v658_v58  ;;  %v2601_v13 = vmul.f32 -1.442695, %v4119_v59  ;;  %v4126_v28 = vadd.f32 %v530_v49, %v3951_v62 }
 0x1ea   :  { %v3207_v5 = vpop.eup %3206  ;;  %v773_v11 = vpack.c.bf16 %v746_v41, %v745_v60  ;;  %3232 = vpow2.f32 %v2598_v38  ;;  %v2967_v48 = vpop.f32.mrf.mxu1 }
 0x1eb   :  { %v3209_v63 = vpop.eup %3208  ;;  %3234 = vpow2.f32 %v2596_v7  ;;  %v2599_v33 = vmul.f32 -1.442695, %v4126_v28  ;;  %v4130_v53 = vadd.f32 %v2967_v48, %v3951_v62  ;;  %v663_v58 = vadd.f32 1.0, %v3207_v5 }
 0x1ec   :  { %v3211_v9 = vpop.eup %3210  ;;  %2980 = vmatprep.mubr.msk.bf16.mxu1 %vm335_vm0, %v773_v11  ;;  %v533_v19 = vpop.f32.mrf.mxu1  ;;  %3236 = vpow2.f32 %v2601_v13  ;;  %v749_v13 = vmul.f32 %v3209_v63, %v4046_v30  ;;  %v751_v48 = vmul.f32 %v3205_v29, %v4042_v8 }
 0x1ed   :  { %v3213_v20 = vpop.eup %3212  ;;  %v661_v31 = vadd.f32 1.0, %v3211_v9  ;;  %v2602_v37 = vmul.f32 -1.442695, %v4130_v53  ;;  %v4135_v38 = vadd.f32 %v533_v19, %v3951_v62  ;;  %2981 = vmatmul.mubr.msk.bf16.gmra.mxu1 %vm335_vm0, %v774_v56  ;;  %3238 = vpow2.f32 %v2599_v33 }
 0x1ee   :  { %v3215_v23 = vpop.eup %3214  ;;  %v752_v60 = vmul.f32 %v3213_v20, %v4050_v43 }
 0x1ef   :  { %v3217_v7 = vpop.eup %3216  ;;  %3240 = vrcp.f32 %v661_v31  ;;  %v664_v41 = vadd.f32 1.0, %v3215_v23  ;;  %v2600_v49 = vmul.f32 -1.442695, %v4135_v38 }
 0x1f0   :  { %v3219_v47 = vpop.eup %3218  ;;  %v750_v11 = vmul.f32 %v3217_v7, %v4054_v57  ;;  %3242 = vpow2.f32 %v2602_v37  ;;  %v776_v43 = vpack.c.bf16 %v752_v60, %v751_v48 }
 0x1f1   :  { %v3221_v62 = vpop.eup %3220  ;;  %3244 = vrcp.f32 %v664_v41  ;;  %v755_v7 = vmul.f32 %v3219_v47, %v4058_v18 }
 0x1f2   :  { %v3223_v56 = vpop.eup %3222  ;;  %v775_v5 = vpack.c.bf16 %v750_v11, %v749_v13  ;;  %v662_v33 = vadd.f32 1.0, %v3221_v62  ;;  %3246 = vpow2.f32 %v2600_v49 }
 0x1f3   :  { %v3225_v9 = vpop.eup %3224  ;;  %3248 = vrcp.f32 %v663_v58  ;;  %v753_v8 = vmul.f32 %v3223_v56, %v4062_v39 }
 0x1f4   :  { %v3227_v19 = vpop.eup %3226  ;;  %3250 = vrcp.f32 %v662_v33  ;;  %v667_v20 = vadd.f32 1.0, %v3225_v9  ;;  %2984 = vmatprep.mubr.msk.bf16.mxu1 %vm335_vm0, %v775_v5 }
 0x1f5   :  { %v3229_v30 = vpop.eup %3228  ;;  %2985 = vmatmul.mubr.msk.bf16.gmra.mxu1 %vm335_vm0, %v776_v43  ;;  %v756_v29 = vmul.f32 %v3227_v19, %v4066_v61 }
 0x1f6   :  { %v3231_v57 = vpop.eup %3230  ;;  %v665_v63 = vadd.f32 1.0, %v3229_v30  ;;  %3252 = vrcp.f32 %v667_v20 }
 0x1f7   :  { %v3233_v31 = vpop.eup %3232  ;;  %v754_v37 = vmul.f32 %v3231_v57, %v4070_v27  ;;  %v778_v11 = vpack.c.bf16 %v756_v29, %v755_v7 }
 0x1f8   :  { %v3235_v23 = vpop.eup %3234  ;;  %v668_v58 = vadd.f32 1.0, %v3233_v31  ;;  %3254 = vrcp.f32 %v665_v63 }
 0x1f9   :  { %v777_v60 = vpack.c.bf16 %v754_v37, %v753_v8  ;;  %v666_v41 = vadd.f32 1.0, %v3235_v23  ;;  %v3237_v49 = vpop.eup %3236  ;;  %v1278_v37 = vpop.permute.xlu0 %1277 }
 0x1fa   :  { %3256 = vrcp.f32 %v668_v58  ;;  %v3239_v13 = vpop.eup %3238  ;;  %v671_v5 = vadd.f32 1.0, %v3237_v49  ;;  %3004 = vmatprep.subr.bf16.mxu0 %v1278_v37  ;;  %3112 = vmatprep.subr.bf16.mxu1 %v1278_v37 }
 0x1fb   :  { %3258 = vrcp.f32 %v666_v41  ;;  %2988 = vmatprep.mubr.msk.bf16.mxu1 %vm335_vm0, %v777_v60  ;;  %v669_v62 = vadd.f32 1.0, %v3239_v13  ;;  %3005 = vmatpush3.bf16.msra.mxu0 %v1278_v37 }
 0x1fc   :  { %v3241_v39 = vpop.eup %3240  ;;  %3114 = vmatpush3.bf16.msra.mxu1 %v1278_v37 }
 0x1fd   :  { %v3243_v61 = vpop.eup %3242  ;;  %2989 = vmatmul.mubr.msk.bf16.gmra.mxu1 %vm335_vm0, %v778_v11  ;;  %3260 = vrcp.f32 %v669_v62  ;;  %v757_v43 = vmul.f32 %v3241_v39, %v4081_v50  ;;  %v4169_v39 = vpop.permute.xlu1 %791 }
 0x1fe   :  { %v3245_v27 = vpop.eup %3244  ;;  %v672_v48 = vadd.f32 1.0, %v3243_v61 }
 0x1ff   :  { %v3247_v56 = vpop.eup %3246  ;;  %v760_v9 = vmul.f32 %v3245_v27, %v4086_v21 }
 0x200   :  { %v3249_v18 = vpop.eup %3248  ;;  %v670_v47 = vadd.f32 1.0, %v3247_v56  ;;  %3262 = vrcp.f32 %v672_v48 }
 0x201   :  { %v3251_v33 = vpop.eup %3250  ;;  %v759_v20 = vmul.f32 %v3249_v18, %v4078_v6  ;;  %v1276_v62 = vpop.permute.xlu1 %1275 }
 0x202   :  { %v758_v19 = vmul.f32 %v3251_v33, %v4092_v40  ;;  %3264 = vrcp.f32 %v670_v47  ;;  %3006 = vmatprep.subr.bf16.mxu0 %v1276_v62  ;;  %3113 = vmatprep.subr.bf16.mxu1 %v1276_v62 }
 0x203   :  { %3266 = vrcp.f32 %v671_v5  ;;  %v3253_v57 = vpop.eup %3252  ;;  %v780_v63 = vpack.c.bf16 %v760_v9, %v759_v20  ;;  %3007 = vmatpush3.bf16.msra.mxu0 %v1276_v62  ;;  %3115 = vmatpush3.bf16.msra.mxu1 %v1276_v62 }
 0x204   :  { %v779_v30 = vpack.c.bf16 %v758_v19, %v757_v43  ;;  %v763_v6 = vmul.f32 %v3253_v57, %v4100_v1 }
 0x205   :  { %v3255_v31 = vpop.eup %3254 }
 0x206   :  { %2992 = vmatprep.mubr.msk.bf16.mxu1 %vm335_vm0, %v779_v30  ;;  %v761_v21 = vmul.f32 %v3255_v31, %v4103_v51 }
 0x207   :  { %v3257_v8 = vpop.eup %3256  ;;  %2993 = vmatmul.mubr.msk.bf16.gmra.mxu1 %vm335_vm0, %v780_v63 }
 0x208   :  { %v3259_v29 = vpop.eup %3258  ;;  %v764_v50 = vmul.f32 %v3257_v8, %v4107_v10 }
 0x209   :  { %v762_v40 = vmul.f32 %v3259_v29, %v4113_v17 }
 0x20a   :  { %v3261_v58 = vpop.eup %3260  ;;  %v782_v7 = vpack.c.bf16 %v764_v50, %v763_v6 }
 0x20b   :  { %v781_v23 = vpack.c.bf16 %v762_v40, %v761_v21  ;;  %v765_v10 = vmul.f32 %v3261_v58, %v4126_v28 }
 0x20d   :  { %2996 = vmatprep.mubr.msk.bf16.mxu1 %vm335_vm0, %v781_v23  ;;  %v3263_v60 = vpop.eup %3262 }
 0x20e   :  { %v768_v1 = vmul.f32 %v3263_v60, %v4130_v53 }
 0x20f   :  { %v3265_v41 = vpop.eup %3264  ;;  %2997 = vmatmul.mubr.msk.bf16.gmra.mxu1 %vm335_vm0, %v782_v7 }
 0x210   :  { %v3267_v51 = vpop.eup %3266  ;;  %v766_v17 = vmul.f32 %v3265_v41, %v4135_v38 }
 0x211   :  { %v767_v13 = vmul.f32 %v3267_v51, %v4119_v59 }
 0x212   :  { %v783_v49 = vpack.c.bf16 %v766_v17, %v765_v10 }
 0x213   :  { %v784_v11 = vpack.c.bf16 %v768_v1, %v767_v13 }
 0x214   :  { %3000 = vmatprep.mubr.msk.bf16.mxu1 %vm335_vm0, %v783_v49 }
 0x217   :  { %3001 = vmatmul.mubr.msk.bf16.gmra.mxu1 %vm335_vm0, %v784_v11 }
 0x29c   :  { %v2974_v28 = vpop.f32.mrf.mxu1 }
 0x29d   :  { %v4172_v38 = vadd.f32 %v2974_v28, %v4169_v39 }
 0x29e   :  { %v876_v53 = vpop.f32.mrf.mxu1 }
 0x29f   :  { %v2621_v61 = vmul.f32 -1.442695, %v4172_v38  ;;  %v4176_v59 = vadd.f32 %v876_v53, %v4169_v39 }
 0x2a0   :  { %v2975_v27 = vpop.f32.mrf.mxu1 }
 0x2a1   :  { %3268 = vpow2.f32 %v2621_v61  ;;  %v2619_v48 = vmul.f32 -1.442695, %v4176_v59  ;;  %v4180_v56 = vadd.f32 %v2975_v27, %v4169_v39 }
 0x2a2   :  { %v879_v5 = vpop.f32.mrf.mxu1 }
 0x2a3   :  { %3270 = vpow2.f32 %v2619_v48  ;;  %v2622_v18 = vmul.f32 -1.442695, %v4180_v56  ;;  %v4184_v47 = vadd.f32 %v879_v5, %v4169_v39 }
 0x2a4   :  { %v2978_v33 = vpop.f32.mrf.mxu1 }
 0x2a5   :  { %3272 = vpow2.f32 %v2622_v18  ;;  %v2620_v9 = vmul.f32 -1.442695, %v4184_v47  ;;  %v4188_v43 = vadd.f32 %v2978_v33, %v4169_v39 }
 0x2a6   :  { %v892_v19 = vpop.f32.mrf.mxu1 }
 0x2a7   :  { %3274 = vpow2.f32 %v2620_v9  ;;  %v2625_v20 = vmul.f32 -1.442695, %v4188_v43  ;;  %v4192_v30 = vadd.f32 %v892_v19, %v4169_v39 }
 0x2a8   :  { %v2979_v57 = vpop.f32.mrf.mxu1 }
 0x2a9   :  { %3276 = vpow2.f32 %v2625_v20  ;;  %v2623_v63 = vmul.f32 -1.442695, %v4192_v30  ;;  %v4196_v31 = vadd.f32 %v2979_v57, %v4169_v39 }
 0x2aa   :  { %v895_v8 = vpop.f32.mrf.mxu1 }
 0x2ab   :  { %3278 = vpow2.f32 %v2623_v63  ;;  %v2626_v29 = vmul.f32 -1.442695, %v4196_v31  ;;  %v4200_v21 = vadd.f32 %v895_v8, %v4169_v39 }
 0x2ad   :  { %3280 = vpow2.f32 %v2626_v29  ;;  %v2624_v50 = vmul.f32 -1.442695, %v4200_v21  ;;  %v2982_v40 = vpop.f32.mrf.mxu1 }
 0x2ae   :  { %v3269_v37 = vpop.eup %3268  ;;  %v4204_v6 = vadd.f32 %v2982_v40, %v4169_v39 }
 0x2af   :  { %v1101_v23 = vadd.f32 1.0, %v3269_v37  ;;  %3282 = vpow2.f32 %v2624_v50  ;;  %v908_v58 = vpop.f32.mrf.mxu1 }
 0x2b0   :  { %v3271_v7 = vpop.eup %3270  ;;  %v2629_v60 = vmul.f32 -1.442695, %v4204_v6  ;;  %v4208_v41 = vadd.f32 %v908_v58, %v4169_v39 }
 0x2b1   :  { %3284 = vrcp.f32 %v1101_v23  ;;  %v1099_v51 = vadd.f32 1.0, %v3271_v7  ;;  %v2983_v10 = vpop.f32.mrf.mxu1 }
 0x2b2   :  { %v3273_v17 = vpop.eup %3272  ;;  %3286 = vpow2.f32 %v2629_v60  ;;  %v2627_v1 = vmul.f32 -1.442695, %v4208_v41  ;;  %v4212_v49 = vadd.f32 %v2983_v10, %v4169_v39 }
 0x2b3   :  { %3288 = vrcp.f32 %v1099_v51  ;;  %v1102_v13 = vadd.f32 1.0, %v3273_v17  ;;  %v911_v11 = vpop.f32.mrf.mxu1 }
 0x2b4   :  { %v3275_v62 = vpop.eup %3274  ;;  %3290 = vpow2.f32 %v2627_v1  ;;  %v2630_v28 = vmul.f32 -1.442695, %v4212_v49  ;;  %v4216_v53 = vadd.f32 %v911_v11, %v4169_v39 }
 0x2b5   :  { %3292 = vrcp.f32 %v1102_v13  ;;  %v1100_v61 = vadd.f32 1.0, %v3275_v62  ;;  %v2986_v27 = vpop.f32.mrf.mxu1 }
 0x2b6   :  { %v3277_v48 = vpop.eup %3276  ;;  %3294 = vpow2.f32 %v2630_v28  ;;  %v2628_v5 = vmul.f32 -1.442695, %v4216_v53  ;;  %v4220_v18 = vadd.f32 %v2986_v27, %v4169_v39 }
 0x2b7   :  { %3296 = vrcp.f32 %v1100_v61  ;;  %v1105_v33 = vadd.f32 1.0, %v3277_v48  ;;  %v924_v9 = vpop.f32.mrf.mxu1 }
 0x2b8   :  { %v3279_v19 = vpop.eup %3278  ;;  %3298 = vpow2.f32 %v2628_v5  ;;  %v2633_v20 = vmul.f32 -1.442695, %v4220_v18  ;;  %v4224_v57 = vadd.f32 %v924_v9, %v4169_v39 }
 0x2b9   :  { %3300 = vrcp.f32 %v1105_v33  ;;  %v1103_v63 = vadd.f32 1.0, %v3279_v19  ;;  %v2987_v8 = vpop.f32.mrf.mxu1 }
 0x2ba   :  { %v3281_v29 = vpop.eup %3280  ;;  %3302 = vpow2.f32 %v2633_v20  ;;  %v2631_v50 = vmul.f32 -1.442695, %v4224_v57  ;;  %v4228_v40 = vadd.f32 %v2987_v8, %v4169_v39 }
 0x2bb   :  { %3304 = vrcp.f32 %v1103_v63  ;;  %v1106_v37 = vadd.f32 1.0, %v3281_v29  ;;  %v927_v23 = vpop.f32.mrf.mxu1 }
 0x2bc   :  { %v3283_v58 = vpop.eup %3282  ;;  %3306 = vpow2.f32 %v2631_v50  ;;  %v2634_v7 = vmul.f32 -1.442695, %v4228_v40  ;;  %v4232_v60 = vadd.f32 %v927_v23, %v4169_v39 }
 0x2bd   :  { %3308 = vrcp.f32 %v1106_v37  ;;  %v1104_v51 = vadd.f32 1.0, %v3283_v58  ;;  %v2990_v10 = vpop.f32.mrf.mxu1 }
 0x2be   :  { %v3285_v17 = vpop.eup %3284  ;;  %3310 = vpow2.f32 %v2634_v7  ;;  %v2632_v1 = vmul.f32 -1.442695, %v4232_v60  ;;  %v4236_v13 = vadd.f32 %v2990_v10, %v4169_v39 }
 0x2bf   :  { %v3287_v11 = vpop.eup %3286  ;;  %3312 = vrcp.f32 %v1104_v51  ;;  %v940_v62 = vpop.f32.mrf.mxu1  ;;  %v1197_v29 = vmul.f32 %v3285_v17, %v4172_v38 }
 0x2c0   :  { %v3289_v28 = vpop.eup %3288  ;;  %v1109_v61 = vadd.f32 1.0, %v3287_v11  ;;  %3314 = vpow2.f32 %v2632_v1  ;;  %v2637_v27 = vmul.f32 -1.442695, %v4236_v13  ;;  %v4240_v48 = vadd.f32 %v940_v62, %v4169_v39 }
 0x2c1   :  { %v3291_v5 = vpop.eup %3290  ;;  %v2991_v33 = vpop.f32.mrf.mxu1  ;;  %v1195_v50 = vmul.f32 %v3289_v28, %v4176_v59 }
 0x2c2   :  { %v3293_v9 = vpop.eup %3292  ;;  %3316 = vrcp.f32 %v1109_v61  ;;  %v1107_v19 = vadd.f32 1.0, %v3291_v5  ;;  %v2635_v20 = vmul.f32 -1.442695, %v4240_v48  ;;  %v4244_v63 = vadd.f32 %v2991_v33, %v4169_v39 }
 0x2c3   :  { %v3295_v8 = vpop.eup %3294  ;;  %v1198_v37 = vmul.f32 %v3293_v9, %v4180_v56  ;;  %3318 = vpow2.f32 %v2637_v27  ;;  %v943_v23 = vpop.f32.mrf.mxu1  ;;  %v4259_v28 = vadd.f32 %v1195_v50, %v3848_v2 }
 0x2c4   :  { %v3297_v58 = vpop.eup %3296  ;;  %3320 = vrcp.f32 %v1107_v19  ;;  %v1110_v7 = vadd.f32 1.0, %v3295_v8  ;;  %v2638_v51 = vmul.f32 -1.442695, %v4244_v63  ;;  %v4251_v10 = vadd.f32 %v943_v23, %v4169_v39 }
 0x2c5   :  { %v3299_v1 = vpop.eup %3298  ;;  %v1196_v11 = vmul.f32 %v3297_v58, %v4184_v47  ;;  %3322 = vpow2.f32 %v2635_v20  ;;  %v4255_v38 = vadd.f32 %v1198_v37, %v3845_v0  ;;  %v4265_v47 = vadd.f32 %v1197_v29, %v3854_v4 }
 0x2c6   :  { %v3301_v62 = vpop.eup %3300  ;;  %3324 = vrcp.f32 %v1110_v7  ;;  %v1108_v59 = vadd.f32 1.0, %v3299_v1  ;;  %v2636_v56 = vmul.f32 -1.442695, %v4251_v10 }
 0x2c7   :  { %v3303_v17 = vpop.eup %3302  ;;  %v4262_v61 = vadd.f32 %v1196_v11, %v3851_v3  ;;  %3326 = vpow2.f32 %v2638_v51  ;;  %v2994_v27 = vpop.f32.mrf.mxu1  ;;  %v1260_v3 = vpack.c.bf16 %v4255_v38, %v4265_v47  ;;  %v1201_v37 = vmul.f32 %v3301_v62, %v4188_v43 }
 0x2c8   :  { %v3305_v5 = vpop.eup %3304  ;;  %3328 = vrcp.f32 %v1108_v59  ;;  %v1113_v0 = vadd.f32 1.0, %v3303_v17  ;;  %v4268_v33 = vadd.f32 %v2994_v27, %v4169_v39 }
 0x2c9   :  { %v3307_v9 = vpop.eup %3306  ;;  %v1259_v19 = vpack.c.bf16 %v4262_v61, %v4259_v28  ;;  %3330 = vpow2.f32 %v2636_v56  ;;  %v956_v2 = vpop.f32.mrf.mxu1  ;;  %v1199_v23 = vmul.f32 %v3305_v5, %v4192_v30 }
 0x2ca   :  { %v3309_v20 = vpop.eup %3308  ;;  %v1111_v8 = vadd.f32 1.0, %v3307_v9  ;;  %v2641_v50 = vmul.f32 -1.442695, %v4268_v33  ;;  %v4276_v4 = vadd.f32 %v956_v2, %v4169_v39  ;;  %3332 = vrcp.f32 %v1113_v0 }
 0x2cb   :  { %v3311_v29 = vpop.eup %3310  ;;  %v1202_v58 = vmul.f32 %v3309_v20, %v4196_v31  ;;  %v2995_v7 = vpop.f32.mrf.mxu1  ;;  %3008 = vmatprep.mubr.msk.bf16.mxu0 %vm335_vm0, %v1259_v19  ;;  %v4296_v0 = vadd.f32 %v1199_v23, %v3866_v14 }
 0x2cc   :  { %v3313_v51 = vpop.eup %3312  ;;  %3334 = vrcp.f32 %v1111_v8  ;;  %v1114_v1 = vadd.f32 1.0, %v3311_v29  ;;  %v2639_v11 = vmul.f32 -1.442695, %v4276_v4  ;;  %v4284_v59 = vadd.f32 %v2995_v7, %v4169_v39  ;;  %3009 = vmatmul.mubr.msk.bf16.vlgmr.msra.gmra.mxu0 %vm335_vm0, %v1260_v3 }
 0x2cd   :  { %v3315_v56 = vpop.eup %3314  ;;  %v4288_v43 = vadd.f32 %v1202_v58, %v3863_v12  ;;  %v1200_v30 = vmul.f32 %v3313_v51, %v4200_v21  ;;  %3336 = vpow2.f32 %v2641_v50  ;;  %v959_v31 = vpop.f32.mrf.mxu1  ;;  %v4302_v21 = vadd.f32 %v1201_v37, %v3872_v16 }
 0x2ce   :  { %3338 = vrcp.f32 %v1114_v1  ;;  %v1112_v62 = vadd.f32 1.0, %v3315_v56  ;;  %v2642_v17 = vmul.f32 -1.442695, %v4284_v59  ;;  %v4293_v27 = vadd.f32 %v959_v31, %v4169_v39 }
 0x2cf   :  { %v3317_v5 = vpop.eup %3316  ;;  %v4299_v9 = vadd.f32 %v1200_v30, %v3869_v15  ;;  %3340 = vpow2.f32 %v2639_v11  ;;  %v2998_v12 = vpop.f32.mrf.mxu1  ;;  %v1262_v29 = vpack.c.bf16 %v4288_v43, %v4302_v21 }
 0x2d0   :  { %v3319_v19 = vpop.eup %3318  ;;  %3342 = vrcp.f32 %v1112_v62  ;;  %v2640_v2 = vmul.f32 -1.442695, %v4293_v27  ;;  %v4306_v20 = vadd.f32 %v2998_v12, %v4169_v39  ;;  %v1205_v23 = vmul.f32 %v3317_v5, %v4204_v6 }
 0x2d1   :  { %v3321_v3 = vpop.eup %3320  ;;  %v1261_v14 = vpack.c.bf16 %v4299_v9, %v4296_v0  ;;  %v1117_v8 = vadd.f32 1.0, %v3319_v19  ;;  %3344 = vpow2.f32 %v2642_v17  ;;  %v972_v15 = vpop.f32.mrf.mxu1 }
 0x2d2   :  { %v3323_v50 = vpop.eup %3322  ;;  %3346 = vpow2.f32 %v2640_v2  ;;  %v2645_v16 = vmul.f32 -1.442695, %v4306_v20  ;;  %v4315_v7 = vadd.f32 %v972_v15, %v4169_v39  ;;  %v1203_v11 = vmul.f32 %v3321_v3, %v4208_v41 }
 0x2d3   :  { %v3325_v37 = vpop.eup %3324  ;;  %3348 = vrcp.f32 %v1117_v8  ;;  %v1115_v58 = vadd.f32 1.0, %v3323_v50  ;;  %v2999_v51 = vpop.f32.mrf.mxu1  ;;  %3012 = vmatprep.mubr.msk.bf16.mxu0 %vm335_vm0, %v1261_v14  ;;  %v4334_v8 = vadd.f32 %v1205_v23, %v3890_v26 }
 0x2d4   :  { %v3327_v1 = vpop.eup %3326  ;;  %v1206_v56 = vmul.f32 %v3325_v37, %v4212_v49  ;;  %3350 = vpow2.f32 %v2645_v16  ;;  %v4321_v30 = vadd.f32 %v2999_v51, %v4169_v39  ;;  %3013 = vmatmul.mubr.msk.bf16.gmra.mxu0 %vm335_vm0, %v1262_v29  ;;  %v2643_v62 = vmul.f32 -1.442695, %v4315_v7 }
 0x2d5   :  { %v3329_v6 = vpop.eup %3328  ;;  %3352 = vrcp.f32 %v1115_v58  ;;  %v1118_v31 = vadd.f32 1.0, %v3327_v1  ;;  %v975_v17 = vpop.f32.mrf.mxu1  ;;  %v4337_v15 = vadd.f32 %v1203_v11, %v3884_v24 }
 0x2d6   :  { %v3331_v5 = vpop.eup %3330  ;;  %v4326_v12 = vadd.f32 %v1206_v56, %v3881_v22  ;;  %v1204_v41 = vmul.f32 %v3329_v6, %v4216_v53  ;;  %v2646_v49 = vmul.f32 -1.442695, %v4321_v30  ;;  %v4331_v19 = vadd.f32 %v975_v17, %v4169_v39 }
 0x2d7   :  { %3354 = vrcp.f32 %v1118_v31  ;;  %v1116_v2 = vadd.f32 1.0, %v3331_v5  ;;  %v3002_v3 = vpop.f32.mrf.mxu1  ;;  %v3333_v14 = vpop.eup %3332 }
 0x2d8   :  { %v4340_v22 = vadd.f32 %v1204_v41, %v3887_v25  ;;  %3356 = vpow2.f32 %v2643_v62  ;;  %v2644_v50 = vmul.f32 -1.442695, %v4331_v19  ;;  %v4344_v29 = vadd.f32 %v3002_v3, %v4169_v39 }
 0x2d9   :  { %v3335_v53 = vpop.eup %3334  ;;  %3358 = vrcp.f32 %v1116_v2  ;;  %v988_v16 = vpop.f32.mrf.mxu1  ;;  %v1264_v26 = vpack.c.bf16 %v4326_v12, %v4334_v8  ;;  %v1209_v17 = vmul.f32 %v3333_v14, %v4220_v18 }
 0x2da   :  { %v3337_v37 = vpop.eup %3336  ;;  %v1263_v24 = vpack.c.bf16 %v4340_v22, %v4337_v15  ;;  %3360 = vpow2.f32 %v2646_v49  ;;  %v2649_v58 = vmul.f32 -1.442695, %v4344_v29  ;;  %v4352_v51 = vadd.f32 %v988_v16, %v4169_v39 }
 0x2db   :  { %v3339_v23 = vpop.eup %3338  ;;  %v1121_v25 = vadd.f32 1.0, %v3337_v37  ;;  %3362 = vpow2.f32 %v2644_v50  ;;  %v3003_v1 = vpop.f32.mrf.mxu1  ;;  %v1207_v56 = vmul.f32 %v3335_v53, %v4224_v57 }
 0x2dc   :  { %v3341_v11 = vpop.eup %3340  ;;  %v1210_v6 = vmul.f32 %v3339_v23, %v4228_v40  ;;  %v4357_v31 = vadd.f32 %v3003_v1, %v4169_v39  ;;  %3016 = vmatprep.mubr.msk.bf16.mxu0 %vm335_vm0, %v1263_v24  ;;  %v2647_v41 = vmul.f32 -1.442695, %v4352_v51 }
 0x2dd   :  { %v3343_v62 = vpop.eup %3342  ;;  %3364 = vrcp.f32 %v1121_v25  ;;  %v1119_v5 = vadd.f32 1.0, %v3341_v11  ;;  %v991_v49 = vpop.f32.mrf.mxu1  ;;  %3017 = vmatmul.mubr.msk.bf16.gmra.mxu0 %vm335_vm0, %v1264_v26  ;;  %v4372_v16 = vadd.f32 %v1207_v56, %v3902_v34 }
 0x2de   :  { %v3345_v2 = vpop.eup %3344  ;;  %v4364_v57 = vadd.f32 %v1210_v6, %v3899_v32  ;;  %v1208_v40 = vmul.f32 %v3343_v62, %v4232_v60  ;;  %3366 = vpow2.f32 %v2649_v58  ;;  %v2650_v50 = vmul.f32 -1.442695, %v4357_v31 }
 0x2df   :  { %v3347_v3 = vpop.eup %3346  ;;  %3368 = vrcp.f32 %v1119_v5  ;;  %v1122_v53 = vadd.f32 1.0, %v3345_v2  ;;  %v4369_v18 = vadd.f32 %v991_v49, %v4169_v39  ;;  %v4378_v60 = vadd.f32 %v1209_v17, %v3908_v36 }
 0x2e0   :  { %v3349_v14 = vpop.eup %3348  ;;  %v4375_v37 = vadd.f32 %v1208_v40, %v3905_v35  ;;  %v1120_v32 = vadd.f32 1.0, %v3347_v3  ;;  %3370 = vpow2.f32 %v2647_v41 }
 0x2e1   :  { %v3351_v26 = vpop.eup %3350  ;;  %3372 = vrcp.f32 %v1122_v53  ;;  %v2648_v24 = vmul.f32 -1.442695, %v4369_v18  ;;  %v1266_v34 = vpack.c.bf16 %v4364_v57, %v4378_v60  ;;  %v1213_v56 = vmul.f32 %v3349_v14, %v4236_v13 }
 0x2e2   :  { %v3353_v23 = vpop.eup %3352  ;;  %v1265_v39 = vpack.c.bf16 %v4375_v37, %v4372_v16  ;;  %3374 = vrcp.f32 %v1120_v32  ;;  %v1125_v25 = vadd.f32 1.0, %v3351_v26 }
 0x2e3   :  { %3376 = vpow2.f32 %v2650_v50  ;;  %v1211_v36 = vmul.f32 %v3353_v23, %v4240_v48  ;;  %v4401_v13 = vadd.f32 %v1213_v56, %v3926_v46 }
 0x2e4   :  { %v3355_v35 = vpop.eup %3354  ;;  %3020 = vmatprep.mubr.msk.bf16.mxu0 %vm335_vm0, %v1265_v39  ;;  %3378 = vpow2.f32 %v2648_v24 }
 0x2e5   :  { %v3357_v58 = vpop.eup %3356  ;;  %v1214_v1 = vmul.f32 %v3355_v35, %v4244_v63  ;;  %3021 = vmatmul.mubr.msk.bf16.gmra.mxu0 %vm335_vm0, %v1266_v34  ;;  %3380 = vrcp.f32 %v1125_v25  ;;  %v4395_v48 = vadd.f32 %v1211_v36, %v3920_v44  ;;  %v4962_v36 = vld [vmem:[#allocation5_spill] sm:$0xff] }
 0x2e6   :  { %v3359_v11 = vpop.eup %3358  ;;  %v1123_v6 = vadd.f32 1.0, %v3357_v58 }
 0x2e7   :  { %v3361_v62 = vpop.eup %3360  ;;  %v1212_v17 = vmul.f32 %v3359_v11, %v4251_v10  ;;  %v4392_v41 = vadd.f32 %v1214_v1, %v3917_v42 }
 0x2e8   :  { %v3363_v5 = vpop.eup %3362  ;;  %3382 = vrcp.f32 %v1123_v6  ;;  %v1126_v49 = vadd.f32 1.0, %v3361_v62 }
 0x2e9   :  { %v4398_v63 = vadd.f32 %v1212_v17, %v3923_v45  ;;  %v1124_v2 = vadd.f32 1.0, %v3363_v5  ;;  %v1268_v53 = vpack.c.bf16 %v4392_v41, %v4401_v13  ;;  %v4963_v5 = vld [vmem:[#allocation6_spill] sm:$0xff] }
 0x2ea   :  { %v3365_v40 = vpop.eup %3364  ;;  %3384 = vrcp.f32 %v1126_v49 }
 0x2eb   :  { %v3367_v10 = vpop.eup %3366  ;;  %v1267_v3 = vpack.c.bf16 %v4398_v63, %v4395_v48  ;;  %3386 = vrcp.f32 %v1124_v2  ;;  %v1217_v26 = vmul.f32 %v3365_v40, %v4268_v33  ;;  %v4964_v2 = vld [vmem:[#allocation7_spill] sm:$0xff] }
 0x2ec   :  { %v3369_v42 = vpop.eup %3368  ;;  %v1129_v14 = vadd.f32 1.0, %v3367_v10  ;;  %v4966_v10 = vld [vmem:[#allocation8_spill] sm:$0xff] }
 0x2ed   :  { %v3371_v44 = vpop.eup %3370  ;;  %3024 = vmatprep.mubr.msk.bf16.mxu0 %vm335_vm0, %v1267_v3  ;;  %v1215_v50 = vmul.f32 %v3369_v42, %v4276_v4  ;;  %v4423_v33 = vadd.f32 %v1217_v26, %v4962_v36  ;;  %v4968_v42 = vld [vmem:[#allocation9_spill] sm:$0xff]  ;;  %v4970_v26 = vld [vmem:[#allocation10_spill] sm:$0xff] }
 0x2ee   :  { %v3373_v45 = vpop.eup %3372  ;;  %v1127_v32 = vadd.f32 1.0, %v3371_v44  ;;  %3025 = vmatmul.mubr.msk.bf16.gmra.mxu0 %vm335_vm0, %v1268_v53  ;;  %v4976_v36 = vld [vmem:[#allocation13_spill] sm:$0xff] }
 0x2ef   :  { %v3375_v46 = vpop.eup %3374  ;;  %v1218_v24 = vmul.f32 %v3373_v45, %v4284_v59  ;;  %v4417_v4 = vadd.f32 %v1215_v50, %v3938_v54 }
 0x2f0   :  { %v3377_v23 = vpop.eup %3376  ;;  %v1216_v39 = vmul.f32 %v3375_v46, %v4293_v27  ;;  %3388 = vrcp.f32 %v1127_v32 }
 0x2f1   :  { %v4414_v34 = vadd.f32 %v1218_v24, %v3935_v52  ;;  %v1130_v25 = vadd.f32 1.0, %v3377_v23  ;;  %v3379_v35 = vpop.eup %3378  ;;  %3390 = vrcp.f32 %v1129_v14  ;;  %v4972_v23 = vld [vmem:[#allocation11_spill] sm:$0xff] }
 0x2f2   :  { %v4420_v58 = vadd.f32 %v1216_v39, %v3941_v55  ;;  %v1128_v59 = vadd.f32 1.0, %v3379_v35  ;;  %v3381_v1 = vpop.eup %3380 }
 0x2f3   :  { %3392 = vrcp.f32 %v1130_v25  ;;  %v1270_v11 = vpack.c.bf16 %v4414_v34, %v4423_v33  ;;  %v1221_v6 = vmul.f32 %v3381_v1, %v4306_v20  ;;  %v4974_v25 = vld [vmem:[#allocation12_spill] sm:$0xff]  ;;  %v3134_v1 = vld [vmem:[%s4934_s1 + $0x20] ss:$12 sps:$4 sm:$0xff]  }
 0x2f4   :  { %v1269_v52 = vpack.c.bf16 %v4420_v58, %v4417_v4  ;;  %3394 = vrcp.f32 %v1128_v59  ;;  %2273 = vrot.lane.b32.xlu0 %v3134_v1, %s3674_s7 }
 0x2f5   :  { %v3383_v27 = vpop.eup %3382 }
 0x2f6   :  { %3028 = vmatprep.mubr.msk.bf16.mxu0 %vm335_vm0, %v1269_v52  ;;  %v1219_v55 = vmul.f32 %v3383_v27, %v4315_v7  ;;  %v4445_v7 = vadd.f32 %v1221_v6, %v4968_v42  ;;  %v3136_v52 = vld [vmem:[%s4934_s1 + $0x1c] ss:$12 sps:$4 sm:$0xff]  }
 0x2f7   :  { %v3385_v54 = vpop.eup %3384  ;;  %3029 = vmatmul.mubr.msk.bf16.gmra.mxu0 %vm335_vm0, %v1270_v11  ;;  %2271 = vrot.lane.b32.xlu1 %v3136_v52, %s3674_s7  ;;  %v3137_v27 = vld [vmem:[%s4934_s1 + $0x8] ss:$12 sps:$4 sm:$0xff]   ;;  %v3139_v11 = vld [vmem:[%s4934_s1 + $0x4] ss:$12 sps:$4 sm:$0xff]  }
 0x2f8   :  { %v3387_v56 = vpop.eup %3386  ;;  %v1222_v62 = vmul.f32 %v3385_v54, %v4321_v30  ;;  %v4439_v40 = vadd.f32 %v1219_v55, %v4964_v2  ;;  %4969 = vst [vmem:[#allocation7_spill] sm:$0xff] %v4445_v7  ;;  %2269 = vrot.lane.b32.xlu0 %v3137_v27, %s3674_s7  ;;  %v4497_v54 = vpop.permute.xlu0 %1281 }
 0x2f9   :  { %v1220_v17 = vmul.f32 %v3387_v56, %v4331_v19 }
 0x2fa   :  { %v4436_v49 = vadd.f32 %v1222_v62, %v4963_v5  ;;  %4965 = vst [vmem:[#allocation5_spill] sm:$0xff] %v4439_v40 }
 0x2fb   :  { %v4442_v3 = vadd.f32 %v1220_v17, %v4966_v10  ;;  %2267 = vrot.lane.b32.xlu1 %v3139_v11, %s3674_s7 }
 0x2fc   :  { %v1272_v30 = vpack.c.bf16 %v4436_v49, %v4445_v7 }
 0x2fd   :  { %4967 = vst [vmem:[#allocation6_spill] sm:$0xff] %v4442_v3  ;;  %v1271_v53 = vpack.c.bf16 %v4442_v3, %v4439_v40  ;;  %v3389_v20 = vpop.eup %3388 }
 0x2fe   :  { %v3391_v19 = vpop.eup %3390  ;;  %v1223_v45 = vmul.f32 %v3389_v20, %v4352_v51 }
 0x2ff   :  { %3032 = vmatprep.mubr.msk.bf16.mxu0 %vm335_vm0, %v1271_v53  ;;  %v1225_v32 = vmul.f32 %v3391_v19, %v4344_v29 }
 0x300   :  { %v3393_v44 = vpop.eup %3392  ;;  %3033 = vmatmul.mubr.msk.bf16.gmra.mxu0 %vm335_vm0, %v1272_v30  ;;  %v4461_v39 = vadd.f32 %v1223_v45, %v4972_v23 }
 0x301   :  { %v1226_v50 = vmul.f32 %v3393_v44, %v4357_v31  ;;  %v3395_v14 = vpop.eup %3394  ;;  %v4467_v59 = vadd.f32 %v1225_v32, %v4976_v36  ;;  %v3132_v31 = vld [vmem:[%s4934_s1 + $0x1c] ss:$12 sps:$4 sm:$0xff]  }
 0x302   :  { %v1224_v46 = vmul.f32 %v3395_v14, %v4369_v18  ;;  %4973 = vst [vmem:[#allocation9_spill] sm:$0xff] %v4461_v39  ;;  %3040 = vmatprep.subr.bf16.mxu1 %v3132_v31  ;;  %v3133_v18 = vld [vmem:[%s4934_s1 + $0x4] ss:$12 sps:$4 sm:$0xff]  }
 0x303   :  { %v4458_v24 = vadd.f32 %v1226_v50, %v4970_v26  ;;  %4977 = vst [vmem:[#allocation11_spill] sm:$0xff] %v4467_v59 }
 0x304   :  { %v4464_v35 = vadd.f32 %v1224_v46, %v4974_v25 }
 0x305   :  { %4971 = vst [vmem:[#allocation8_spill] sm:$0xff] %v4458_v24  ;;  %v1274_v29 = vpack.c.bf16 %v4458_v24, %v4467_v59 }
 0x306   :  { %4975 = vst [vmem:[#allocation10_spill] sm:$0xff] %v4464_v35  ;;  %v1273_v51 = vpack.c.bf16 %v4464_v35, %v4461_v39 }
 0x308   :  { %3036 = vmatprep.mubr.msk.bf16.mxu1 %vm335_vm0, %v1273_v51 }
 0x309   :  { %3037 = vmatmul.mubr.msk.bf16.vlgmr.msra.gmra.mxu1 %vm335_vm0, %v1274_v29 }
 0x30a   :  { %3041 = vmatpush3.bf16.msra.mxu1 %v3132_v31 }
 0x30b   :  { %3042 = vmatprep.subr.bf16.mxu1 %v3133_v18 }
 0x30e   :  { %3043 = vmatpush3.bf16.msra.mxu1 %v3133_v18 }
 0x38c   :  { %v3010_v55 = vpop.f32.mrf.mxu0 }
 0x38d   :  { %v4500_v56 = vadd.f32 %v3010_v55, %v4497_v54 }
 0x38e   :  { %v1366_v6 = vpop.f32.mrf.mxu0 }
 0x38f   :  { %v2669_v62 = vmul.f32 -1.442695, %v4500_v56  ;;  %v4504_v17 = vadd.f32 %v1366_v6, %v4497_v54 }
 0x390   :  { %v3011_v5 = vpop.f32.mrf.mxu0 }
 0x391   :  { %3396 = vpow2.f32 %v2669_v62  ;;  %v2667_v2 = vmul.f32 -1.442695, %v4504_v17  ;;  %v4508_v10 = vadd.f32 %v3011_v5, %v4497_v54 }
 0x392   :  { %v1369_v42 = vpop.f32.mrf.mxu0 }
 0x393   :  { %3398 = vpow2.f32 %v2667_v2  ;;  %v2670_v53 = vmul.f32 -1.442695, %v4508_v10  ;;  %v4512_v20 = vadd.f32 %v1369_v42, %v4497_v54 }
 0x394   :  { %v3014_v30 = vpop.f32.mrf.mxu0 }
 0x395   :  { %3400 = vpow2.f32 %v2670_v53  ;;  %v2668_v19 = vmul.f32 -1.442695, %v4512_v20  ;;  %v4516_v44 = vadd.f32 %v3014_v30, %v4497_v54 }
 0x396   :  { %v1382_v45 = vpop.f32.mrf.mxu0 }
 0x397   :  { %3402 = vpow2.f32 %v2668_v19  ;;  %v2673_v50 = vmul.f32 -1.442695, %v4516_v44  ;;  %v4520_v14 = vadd.f32 %v1382_v45, %v4497_v54 }
 0x398   :  { %v3015_v32 = vpop.f32.mrf.mxu0 }
 0x399   :  { %3404 = vpow2.f32 %v2673_v50  ;;  %v2671_v46 = vmul.f32 -1.442695, %v4520_v14  ;;  %v4524_v26 = vadd.f32 %v3015_v32, %v4497_v54 }
 0x39a   :  { %v1385_v23 = vpop.f32.mrf.mxu0 }
 0x39b   :  { %3406 = vpow2.f32 %v2671_v46  ;;  %v2674_v25 = vmul.f32 -1.442695, %v4524_v26  ;;  %v4528_v36 = vadd.f32 %v1385_v23, %v4497_v54 }
 0x39d   :  { %3408 = vpow2.f32 %v2674_v25  ;;  %v2672_v51 = vmul.f32 -1.442695, %v4528_v36  ;;  %v3018_v29 = vpop.f32.mrf.mxu0 }
 0x39e   :  { %v3397_v31 = vpop.eup %3396  ;;  %v4532_v18 = vadd.f32 %v3018_v29, %v4497_v54 }
 0x39f   :  { %v1591_v1 = vadd.f32 1.0, %v3397_v31  ;;  %3410 = vpow2.f32 %v2672_v51  ;;  %v1398_v52 = vpop.f32.mrf.mxu0 }
 0x3a0   :  { %v3399_v27 = vpop.eup %3398  ;;  %v2677_v11 = vmul.f32 -1.442695, %v4532_v18  ;;  %v4536_v55 = vadd.f32 %v1398_v52, %v4497_v54 }
 0x3a1   :  { %3412 = vrcp.f32 %v1591_v1  ;;  %v1589_v6 = vadd.f32 1.0, %v3399_v27  ;;  %v3019_v62 = vpop.f32.mrf.mxu0 }
 0x3a2   :  { %v3401_v5 = vpop.eup %3400  ;;  %3414 = vpow2.f32 %v2677_v11  ;;  %v2675_v2 = vmul.f32 -1.442695, %v4536_v55  ;;  %v4540_v42 = vadd.f32 %v3019_v62, %v4497_v54 }
 0x3a3   :  { %3416 = vrcp.f32 %v1589_v6  ;;  %v1592_v53 = vadd.f32 1.0, %v3401_v5  ;;  %v1401_v30 = vpop.f32.mrf.mxu0 }
 0x3a4   :  { %v3403_v19 = vpop.eup %3402  ;;  %3418 = vpow2.f32 %v2675_v2  ;;  %v2678_v45 = vmul.f32 -1.442695, %v4540_v42  ;;  %v4544_v50 = vadd.f32 %v1401_v30, %v4497_v54 }
 0x3a5   :  { %3420 = vrcp.f32 %v1592_v53  ;;  %v1590_v32 = vadd.f32 1.0, %v3403_v19  ;;  %v3022_v46 = vpop.f32.mrf.mxu0 }
 0x3a6   :  { %v3405_v23 = vpop.eup %3404  ;;  %3422 = vpow2.f32 %v2678_v45  ;;  %v2676_v25 = vmul.f32 -1.442695, %v4544_v50  ;;  %v4548_v51 = vadd.f32 %v3022_v46, %v4497_v54 }
 0x3a7   :  { %3424 = vrcp.f32 %v1590_v32  ;;  %v1595_v29 = vadd.f32 1.0, %v3405_v23  ;;  %v1414_v31 = vpop.f32.mrf.mxu0 }
 0x3a8   :  { %v3407_v1 = vpop.eup %3406  ;;  %3426 = vpow2.f32 %v2676_v25  ;;  %v2681_v52 = vmul.f32 -1.442695, %v4548_v51  ;;  %v4552_v27 = vadd.f32 %v1414_v31, %v4497_v54 }
 0x3a9   :  { %3428 = vrcp.f32 %v1595_v29  ;;  %v1593_v11 = vadd.f32 1.0, %v3407_v1  ;;  %v3023_v6 = vpop.f32.mrf.mxu0 }
 0x3aa   :  { %v3409_v62 = vpop.eup %3408  ;;  %3430 = vpow2.f32 %v2681_v52  ;;  %v2679_v5 = vmul.f32 -1.442695, %v4552_v27  ;;  %v4556_v2 = vadd.f32 %v3023_v6, %v4497_v54 }
 0x3ab   :  { %3432 = vrcp.f32 %v1593_v11  ;;  %v1596_v53 = vadd.f32 1.0, %v3409_v62  ;;  %v1417_v30 = vpop.f32.mrf.mxu0 }
 0x3ac   :  { %v3411_v19 = vpop.eup %3410  ;;  %3434 = vpow2.f32 %v2679_v5  ;;  %v2682_v45 = vmul.f32 -1.442695, %v4556_v2  ;;  %v4560_v32 = vadd.f32 %v1417_v30, %v4497_v54 }
 0x3ad   :  { %3436 = vrcp.f32 %v1596_v53  ;;  %v1594_v46 = vadd.f32 1.0, %v3411_v19 }
 0x3ae   :  { %v3413_v23 = vpop.eup %3412  ;;  %3438 = vpow2.f32 %v2682_v45  ;;  %v2680_v25 = vmul.f32 -1.442695, %v4560_v32  ;;  %v3026_v29 = vpop.f32.mrf.mxu0 }
 0x3af   :  { %v3415_v31 = vpop.eup %3414  ;;  %3440 = vrcp.f32 %v1594_v46  ;;  %v4564_v1 = vadd.f32 %v3026_v29, %v4497_v54  ;;  %v1687_v35 = vmul.f32 %v3413_v23, %v4500_v56 }
 0x3b0   :  { %v3417_v52 = vpop.eup %3416  ;;  %v1599_v11 = vadd.f32 1.0, %v3415_v31  ;;  %3442 = vpow2.f32 %v2680_v25  ;;  %v1430_v6 = vpop.f32.mrf.mxu0 }
 0x3b1   :  { %v3419_v62 = vpop.eup %3418  ;;  %v2685_v5 = vmul.f32 -1.442695, %v4564_v1  ;;  %v4568_v53 = vadd.f32 %v1430_v6, %v4497_v54 }
 0x3b2   :  { %v3421_v30 = vpop.eup %3420  ;;  %3444 = vrcp.f32 %v1599_v11  ;;  %v1597_v19 = vadd.f32 1.0, %v3419_v62  ;;  %v3027_v45 = vpop.f32.mrf.mxu0  ;;  %v1685_v11 = vmul.f32 %v3417_v52, %v4504_v17 }
 0x3b3   :  { %v3423_v59 = vpop.eup %3422  ;;  %v1688_v46 = vmul.f32 %v3421_v30, %v4508_v10  ;;  %3446 = vpow2.f32 %v2685_v5  ;;  %v2683_v29 = vmul.f32 -1.442695, %v4568_v53  ;;  %v4573_v31 = vadd.f32 %v3027_v45, %v4497_v54 }
 0x3b4   :  { %v3425_v25 = vpop.eup %3424  ;;  %3448 = vrcp.f32 %v1597_v19  ;;  %v1600_v39 = vadd.f32 1.0, %v3423_v59  ;;  %v1433_v6 = vpop.f32.mrf.mxu0 }
 0x3b5   :  { %v3427_v24 = vpop.eup %3426  ;;  %v1686_v62 = vmul.f32 %v3425_v25, %v4512_v20  ;;  %3450 = vpow2.f32 %v2683_v29  ;;  %v2686_v10 = vmul.f32 -1.442695, %v4573_v31  ;;  %v4580_v45 = vadd.f32 %v1433_v6, %v4497_v54 }
 0x3b6   :  { %v3429_v5 = vpop.eup %3428  ;;  %3452 = vrcp.f32 %v1600_v39  ;;  %v1598_v30 = vadd.f32 1.0, %v3427_v24  ;;  %v1723_v3 = vpack.c.bf16 %v1688_v46, %v1687_v35 }
 0x3b7   :  { %v3431_v7 = vpop.eup %3430  ;;  %v1722_v56 = vpack.c.bf16 %v1686_v62, %v1685_v11  ;;  %3454 = vpow2.f32 %v2686_v10  ;;  %v3030_v59 = vpop.f32.mrf.mxu0  ;;  %v2684_v17 = vmul.f32 -1.442695, %v4580_v45 }
 0x3b8   :  { %v3433_v23 = vpop.eup %3432  ;;  %3456 = vrcp.f32 %v1598_v30  ;;  %v1603_v19 = vadd.f32 1.0, %v3431_v7  ;;  %v4584_v20 = vadd.f32 %v3030_v59, %v4497_v54  ;;  %v1691_v59 = vmul.f32 %v3429_v5, %v4516_v44 }
 0x3b9   :  { %v3435_v52 = vpop.eup %3434  ;;  %v1446_v29 = vpop.f32.mrf.mxu0  ;;  %3044 = vmatprep.mubr.msk.bf16.mxu1 %vm335_vm0, %v1722_v56 }
 0x3ba   :  { %v3437_v24 = vpop.eup %3436  ;;  %3458 = vrcp.f32 %v1603_v19  ;;  %v1601_v39 = vadd.f32 1.0, %v3435_v52  ;;  %v2689_v35 = vmul.f32 -1.442695, %v4584_v20  ;;  %v4589_v46 = vadd.f32 %v1446_v29, %v4497_v54  ;;  %3045 = vmatmul.mubr.msk.bf16.vlgmr.msra.gmra.mxu1 %vm335_vm0, %v1723_v3 }
 0x3bb   :  { %v3439_v7 = vpop.eup %3438  ;;  %v1692_v25 = vmul.f32 %v3437_v24, %v4524_v26  ;;  %3460 = vpow2.f32 %v2684_v17  ;;  %v3031_v6 = vpop.f32.mrf.mxu0  ;;  %v1689_v19 = vmul.f32 %v3433_v23, %v4520_v14 }
 0x3bc   :  { %v3441_v11 = vpop.eup %3440  ;;  %3462 = vrcp.f32 %v1601_v39  ;;  %v1604_v62 = vadd.f32 1.0, %v3439_v7  ;;  %v2687_v10 = vmul.f32 -1.442695, %v4589_v46  ;;  %v4595_v30 = vadd.f32 %v3031_v6, %v4497_v54 }
 0x3bd   :  { %v3443_v56 = vpop.eup %3442  ;;  %v1690_v3 = vmul.f32 %v3441_v11, %v4528_v36  ;;  %3464 = vpow2.f32 %v2689_v35  ;;  %v1449_v52 = vpop.f32.mrf.mxu0  ;;  %v1725_v6 = vpack.c.bf16 %v1692_v25, %v1691_v59 }
 0x3be   :  { %3466 = vrcp.f32 %v1604_v62  ;;  %v1602_v26 = vadd.f32 1.0, %v3443_v56  ;;  %v2690_v17 = vmul.f32 -1.442695, %v4595_v30  ;;  %v4602_v29 = vadd.f32 %v1449_v52, %v4497_v54 }
 0x3bf   :  { %v3445_v24 = vpop.eup %3444  ;;  %v1724_v39 = vpack.c.bf16 %v1690_v3, %v1689_v19  ;;  %3468 = vpow2.f32 %v2687_v10 }
 0x3c0   :  { %v3447_v7 = vpop.eup %3446  ;;  %3470 = vrcp.f32 %v1602_v26  ;;  %v2688_v44 = vmul.f32 -1.442695, %v4602_v29  ;;  %v3034_v14 = vpop.f32.mrf.mxu0 }
 0x3c1   :  { %v3449_v5 = vpop.eup %3448  ;;  %3472 = vpow2.f32 %v2690_v17  ;;  %v4606_v36 = vadd.f32 %v3034_v14, %v4497_v54  ;;  %3048 = vmatprep.mubr.msk.bf16.mxu1 %vm335_vm0, %v1724_v39 }
 0x3c2   :  { %v3451_v23 = vpop.eup %3450  ;;  %3474 = vpow2.f32 %v2688_v44  ;;  %v1462_v35 = vpop.f32.mrf.mxu0  ;;  %3049 = vmatmul.mubr.msk.bf16.gmra.mxu1 %vm335_vm0, %v1725_v6  ;;  %v1693_v39 = vmul.f32 %v3449_v5, %v4536_v55  ;;  %v1607_v44 = vadd.f32 1.0, %v3447_v7 }
 0x3c3   :  { %v3453_v11 = vpop.eup %3452  ;;  %v1605_v62 = vadd.f32 1.0, %v3451_v23  ;;  %v2693_v25 = vmul.f32 -1.442695, %v4606_v36  ;;  %v4612_v10 = vadd.f32 %v1462_v35, %v4497_v54  ;;  %v1695_v35 = vmul.f32 %v3445_v24, %v4532_v18 }
 0x3c4   :  { %v3455_v56 = vpop.eup %3454  ;;  %v1696_v59 = vmul.f32 %v3453_v11, %v4540_v42  ;;  %v3035_v19 = vpop.f32.mrf.mxu0 }
 0x3c5   :  { %v3457_v3 = vpop.eup %3456  ;;  %3476 = vrcp.f32 %v1605_v62  ;;  %v1608_v52 = vadd.f32 1.0, %v3455_v56  ;;  %v2691_v26 = vmul.f32 -1.442695, %v4612_v10  ;;  %v4617_v17 = vadd.f32 %v3035_v19, %v4497_v54 }
 0x3c6   :  { %v1694_v6 = vmul.f32 %v3457_v3, %v4544_v50  ;;  %3478 = vpow2.f32 %v2693_v25  ;;  %v1465_v14 = vpop.f32.mrf.mxu0  ;;  %v1727_v40 = vpack.c.bf16 %v1696_v59, %v1695_v35 }
 0x3c7   :  { %v3459_v23 = vpop.eup %3458  ;;  %3480 = vrcp.f32 %v1608_v52  ;;  %v2694_v42 = vmul.f32 -1.442695, %v4617_v17  ;;  %v4624_v11 = vadd.f32 %v1465_v14, %v4497_v54 }
 0x3c8   :  { %v3461_v62 = vpop.eup %3460  ;;  %v1726_v56 = vpack.c.bf16 %v1694_v6, %v1693_v39  ;;  %3482 = vpow2.f32 %v2691_v26  ;;  %v1699_v35 = vmul.f32 %v3459_v23, %v4548_v51 }
 0x3c9   :  { %v3463_v19 = vpop.eup %3462  ;;  %v1606_v55 = vadd.f32 1.0, %v3461_v62  ;;  %3484 = vpow2.f32 %v2694_v42  ;;  %v2692_v50 = vmul.f32 -1.442695, %v4624_v11  ;;  %v3038_v5 = vpop.f32.mrf.mxu1 }
 0x3ca   :  { %v3465_v7 = vpop.eup %3464  ;;  %3486 = vrcp.f32 %v1607_v44  ;;  %3052 = vmatprep.mubr.msk.bf16.mxu1 %vm335_vm0, %v1726_v56  ;;  %v4629_v25 = vadd.f32 %v3038_v5, %v4497_v54  ;;  %v1697_v42 = vmul.f32 %v3463_v19, %v4552_v27 }
 0x3cb   :  { %v3467_v18 = vpop.eup %3466  ;;  %3488 = vrcp.f32 %v1606_v55  ;;  %v1611_v24 = vadd.f32 1.0, %v3465_v7  ;;  %3053 = vmatmul.mubr.msk.bf16.gmra.mxu1 %vm335_vm0, %v1727_v40  ;;  %v1478_v59 = vpop.f32.mrf.mxu1 }
 0x3cc   :  { %v3469_v3 = vpop.eup %3468  ;;  %3490 = vpow2.f32 %v2692_v50  ;;  %v1700_v26 = vmul.f32 %v3467_v18, %v4556_v2  ;;  %v2697_v6 = vmul.f32 -1.442695, %v4629_v25  ;;  %v4635_v44 = vadd.f32 %v1478_v59, %v4497_v54 }
 0x3cd   :  { %v3471_v52 = vpop.eup %3470  ;;  %v1609_v39 = vadd.f32 1.0, %v3469_v3  ;;  %3492 = vrcp.f32 %v1611_v24  ;;  %v3039_v40 = vpop.f32.mrf.mxu1 }
 0x3ce   :  { %v3473_v14 = vpop.eup %3472  ;;  %v1698_v62 = vmul.f32 %v3471_v52, %v4560_v32  ;;  %v2695_v2 = vmul.f32 -1.442695, %v4635_v44  ;;  %v4642_v50 = vadd.f32 %v3039_v40, %v4497_v54  ;;  %v1729_v3 = vpack.c.bf16 %v1700_v26, %v1699_v35 }
 0x3cf   :  { %v3475_v56 = vpop.eup %3474  ;;  %3494 = vrcp.f32 %v1609_v39  ;;  %v1612_v55 = vadd.f32 1.0, %v3473_v14  ;;  %v1481_v18 = vpop.f32.mrf.mxu1 }
 0x3d0   :  { %v1728_v7 = vpack.c.bf16 %v1698_v62, %v1697_v42  ;;  %v1610_v5 = vadd.f32 1.0, %v3475_v56  ;;  %3496 = vpow2.f32 %v2697_v6  ;;  %v2698_v51 = vmul.f32 -1.442695, %v4642_v50 }
 0x3d1   :  { %3498 = vrcp.f32 %v1612_v55  ;;  %v4646_v27 = vadd.f32 %v1481_v18, %v4497_v54 }
 0x3d2   :  { %v3477_v32 = vpop.eup %3476  ;;  %3500 = vrcp.f32 %v1610_v5  ;;  %3056 = vmatprep.mubr.msk.bf16.mxu1 %vm335_vm0, %v1728_v7 }
 0x3d3   :  { %v3479_v23 = vpop.eup %3478  ;;  %3502 = vpow2.f32 %v2695_v2  ;;  %v2696_v19 = vmul.f32 -1.442695, %v4646_v27  ;;  %3057 = vmatmul.mubr.msk.bf16.gmra.mxu1 %vm335_vm0, %v1729_v3  ;;  %v1701_v62 = vmul.f32 %v3477_v32, %v4568_v53 }
 0x3d4   :  { %v3481_v24 = vpop.eup %3480  ;;  %3504 = vpow2.f32 %v2698_v51  ;;  %v1615_v6 = vadd.f32 1.0, %v3479_v23 }
 0x3d5   :  { %v3483_v59 = vpop.eup %3482  ;;  %3506 = vpow2.f32 %v2696_v19  ;;  %v1704_v35 = vmul.f32 %v3481_v24, %v4573_v31 }
 0x3d6   :  { %v3485_v52 = vpop.eup %3484  ;;  %v1613_v26 = vadd.f32 1.0, %v3483_v59 }
 0x3d7   :  { %v3487_v39 = vpop.eup %3486  ;;  %v1616_v54 = vadd.f32 1.0, %v3485_v52 }
 0x3d8   :  { %v3489_v14 = vpop.eup %3488  ;;  %v1703_v56 = vmul.f32 %v3487_v39, %v4564_v1 }
 0x3d9   :  { %v3491_v42 = vpop.eup %3490  ;;  %v1702_v40 = vmul.f32 %v3489_v14, %v4580_v45  ;;  %3508 = vrcp.f32 %v1616_v54 }
 0x3da   :  { %3510 = vrcp.f32 %v1613_v26  ;;  %v1614_v55 = vadd.f32 1.0, %v3491_v42  ;;  %v3493_v2 = vpop.eup %3492  ;;  %v1731_v18 = vpack.c.bf16 %v1704_v35, %v1703_v56  ;;  %v2274_v56 = vpop.permute.xlu0 %2273 }
 0x3db   :  { %v1730_v7 = vpack.c.bf16 %v1702_v40, %v1701_v62  ;;  %3512 = vrcp.f32 %v1615_v6  ;;  %v1707_v52 = vmul.f32 %v3493_v2, %v4584_v20 }
 0x3dc   :  { %v3495_v5 = vpop.eup %3494  ;;  %3514 = vrcp.f32 %v1614_v55  ;;  %v2272_v55 = vpop.permute.xlu1 %2271 }
 0x3dd   :  { %v3497_v3 = vpop.eup %3496  ;;  %3060 = vmatprep.mubr.msk.bf16.mxu1 %vm335_vm0, %v1730_v7  ;;  %v1705_v32 = vmul.f32 %v3495_v5, %v4589_v46  ;;  %v2277_v7 = vsel %vm2275_vm1, %v2272_v55, %v2274_v56 }
 0x3de   :  { %v3499_v31 = vpop.eup %3498  ;;  %v1619_v51 = vadd.f32 1.0, %v3497_v3  ;;  %3061 = vmatmul.mubr.msk.bf16.gmra.mxu1 %vm335_vm0, %v1731_v18  ;;  %3076 = vmatprep.subr.bf16.mxu0 %v2277_v7 }
 0x3df   :  { %v3501_v53 = vpop.eup %3500  ;;  %v1708_v1 = vmul.f32 %v3499_v31, %v4595_v30  ;;  %3077 = vmatpush3.bf16.msra.mxu0 %v2277_v7 }
 0x3e0   :  { %v3503_v45 = vpop.eup %3502  ;;  %v1706_v23 = vmul.f32 %v3501_v53, %v4602_v29  ;;  %3516 = vrcp.f32 %v1619_v51 }
 0x3e1   :  { %v3505_v19 = vpop.eup %3504  ;;  %v1617_v24 = vadd.f32 1.0, %v3503_v45  ;;  %v1733_v54 = vpack.c.bf16 %v1708_v1, %v1707_v52  ;;  %v2270_v45 = vpop.permute.xlu0 %2269 }
 0x3e2   :  { %v3507_v59 = vpop.eup %3506  ;;  %v1732_v26 = vpack.c.bf16 %v1706_v23, %v1705_v32  ;;  %v1620_v39 = vadd.f32 1.0, %v3505_v19  ;;  %v2268_v32 = vpop.permute.xlu1 %2267  ;;  %v2243_v23 = vlaneseq }
 0x3e3   :  { %3518 = vrcp.f32 %v1617_v24  ;;  %v1618_v6 = vadd.f32 1.0, %v3507_v59  ;;  %v2276_v1 = vsel %vm2275_vm1, %v2268_v32, %v2270_v45  ;;  %v4685_v59 = vld [vmem:[%s4935_s2 + $0x1] ss:$0 sm:$0xff] }
 0x3e4   :  { %3520 = vrcp.f32 %v1620_v39  ;;  %3064 = vmatprep.mubr.msk.bf16.mxu1 %vm335_vm0, %v1732_v26  ;;  %3078 = vmatprep.subr.bf16.mxu0 %v2276_v1 }
 0x3e5   :  { %3522 = vrcp.f32 %v1618_v6  ;;  %3079 = vmatpush3.bf16.msra.mxu0 %v2276_v1 }
 0x3e6   :  { %v3509_v46 = vpop.eup %3508  ;;  %3065 = vmatmul.mubr.msk.bf16.gmra.mxu1 %vm335_vm0, %v1733_v54 }
 0x3e7   :  { %v3511_v30 = vpop.eup %3510  ;;  %v1712_v35 = vmul.f32 %v3509_v46, %v4617_v17 }
 0x3e8   :  { %v3513_v29 = vpop.eup %3512  ;;  %v1709_v20 = vmul.f32 %v3511_v30, %v4612_v10 }
 0x3e9   :  { %v3515_v14 = vpop.eup %3514  ;;  %v1711_v62 = vmul.f32 %v3513_v29, %v4606_v36 }
 0x3ea   :  { %v1710_v42 = vmul.f32 %v3515_v14, %v4624_v11 }
 0x3eb   :  { %v1735_v2 = vpack.c.bf16 %v1712_v35, %v1711_v62 }
 0x3ec   :  { %v1734_v40 = vpack.c.bf16 %v1710_v42, %v1709_v20 }
 0x3ed   :  { %v3517_v5 = vpop.eup %3516 }
 0x3ee   :  { %3068 = vmatprep.mubr.msk.bf16.mxu1 %vm335_vm0, %v1734_v40  ;;  %v1715_v31 = vmul.f32 %v3517_v5, %v4629_v25 }
 0x3ef   :  { %3069 = vmatmul.mubr.msk.bf16.gmra.mxu1 %vm335_vm0, %v1735_v2 }
 0x3f0   :  { %v3519_v17 = vpop.eup %3518 }
 0x3f1   :  { %v3521_v10 = vpop.eup %3520  ;;  %v1713_v36 = vmul.f32 %v3519_v17, %v4635_v44  ;;  %v2225_v44 = vld [vmem:[%s4935_s2 + $0x1] sm:$0x3]  ;;  %s3677_s2 = smov [#allocation2]  }
 0x3f2   :  { %v3523_v18 = vpop.eup %3522  ;;  %v1716_v11 = vmul.f32 %v3521_v10, %v4642_v50  ;;  %v2244_v50 = vshrl.u32 %v2243_v23, 7 }
 0x3f3   :  { %v1714_v3 = vmul.f32 %v3523_v18, %v4646_v27 }
 0x3f4   :  { %v1737_v53 = vpack.c.bf16 %v1716_v11, %v1715_v31  ;;  %v2249_v27 = vsub.s32 1, %v2244_v50  ;;  %v2245_v25 = vsub.s32 0, %v2244_v50 }
 0x3f5   :  { %v1736_v51 = vpack.c.bf16 %v1714_v3, %v1713_v36 }
 0x3f6   :  { %v2250_v19 = vrot.slane %v2225_v44, %v2249_v27  ;;  %v2246_v24 = vrot.slane %v2225_v44, %v2245_v25 }
 0x3f7   :  { %3072 = vmatprep.mubr.msk.bf16.mxu1 %vm335_vm0, %v1736_v51 }
 0x3f8   :  { %3073 = vmatmul.mubr.msk.bf16.gmra.mxu1 %vm335_vm0, %v1737_v53  ;;  %2282 = vrot.lane.b32.xlu0 %v2250_v19, %s3674_s7 }
 0x3f9   :  { %2280 = vrot.lane.b32.xlu1 %v2246_v24, %s3674_s7  ;;  %s2533_s7 = sshll.u32 %s3677_s2, 4  ;;  %s2534_s7 = int_to_ptr.vmem [resolvable:$true] %s2533_s7 }
 0x3fa   :  { %s3652_s10 = scalar_lea.vmem %s2534_s7, 4096  ;;  %p3657_p1 = scmp.lt.s32.totalorder %s2534_s7, %s2534_s7 }
 0x3fb   :  { %p3653_p0 = scmp.ne.s32.totalorder %s2534_s7, %s3652_s10  ;;  %p3658_p2 = scmp.lt.s32.totalorder %s3652_s10, %s3652_s10 }
 0x3fd   :  { %p3659_p3 = por %p3658_p2, %p3657_p1 }
 0x3ff   :  { %p3660_p4 = pnand %p3659_p3, %p3653_p0 }
 0x47a   :  { %v3046_v52 = vpop.f32.mrf.mxu1 }
 0x47b   :  { %v4688_v26 = vadd.f32 %v3046_v52, %v4685_v59 }
 0x47c   :  { %v1838_v39 = vpop.f32.mrf.mxu1 }
 0x47d   :  { %v2720_v6 = vmul.f32 -1.442695, %v4688_v26  ;;  %v4692_v54 = vadd.f32 %v4685_v59, %v1838_v39 }
 0x47e   :  { %v3047_v46 = vpop.f32.mrf.mxu1 }
 0x47f   :  { %3524 = vpow2.f32 %v2720_v6  ;;  %v2718_v30 = vmul.f32 -1.442695, %v4692_v54  ;;  %v4696_v29 = vadd.f32 %v3047_v46, %v4685_v59 }
 0x480   :  { %v1841_v14 = vpop.f32.mrf.mxu1 }
 0x481   :  { %3526 = vpow2.f32 %v2718_v30  ;;  %v2721_v35 = vmul.f32 -1.442695, %v4696_v29  ;;  %v4700_v20 = vadd.f32 %v4685_v59, %v1841_v14 }
 0x482   :  { %v3050_v42 = vpop.f32.mrf.mxu1 }
 0x483   :  { %3528 = vpow2.f32 %v2721_v35  ;;  %v2719_v62 = vmul.f32 -1.442695, %v4700_v20  ;;  %v4704_v40 = vadd.f32 %v3050_v42, %v4685_v59 }
 0x484   :  { %v1854_v56 = vpop.f32.mrf.mxu1 }
 0x485   :  { %3530 = vpow2.f32 %v2719_v62  ;;  %v2724_v55 = vmul.f32 -1.442695, %v4704_v40  ;;  %v4708_v2 = vadd.f32 %v4685_v59, %v1854_v56 }
 0x486   :  { %v3051_v7 = vpop.f32.mrf.mxu1 }
 0x487   :  { %3532 = vpow2.f32 %v2724_v55  ;;  %v2722_v5 = vmul.f32 -1.442695, %v4708_v2  ;;  %v4712_v17 = vadd.f32 %v3051_v7, %v4685_v59 }
 0x488   :  { %v1857_v10 = vpop.f32.mrf.mxu1 }
 0x489   :  { %3534 = vpow2.f32 %v2722_v5  ;;  %v2725_v18 = vmul.f32 -1.442695, %v4712_v17  ;;  %v4716_v11 = vadd.f32 %v4685_v59, %v1857_v10 }
 0x48b   :  { %3536 = vpow2.f32 %v2725_v18  ;;  %v2723_v36 = vmul.f32 -1.442695, %v4716_v11  ;;  %v3054_v3 = vpop.f32.mrf.mxu1 }
 0x48c   :  { %v3525_v31 = vpop.eup %3524  ;;  %v4720_v51 = vadd.f32 %v3054_v3, %v4685_v59 }
 0x48d   :  { %v2063_v53 = vadd.f32 1.0, %v3525_v31  ;;  %3538 = vpow2.f32 %v2723_v36  ;;  %v1870_v45 = vpop.f32.mrf.mxu1 }
 0x48e   :  { %v3527_v32 = vpop.eup %3526  ;;  %v2728_v1 = vmul.f32 -1.442695, %v4720_v51  ;;  %v4724_v23 = vadd.f32 %v4685_v59, %v1870_v45 }
 0x48f   :  { %3540 = vrcp.f32 %v2063_v53  ;;  %v2061_v50 = vadd.f32 1.0, %v3527_v32  ;;  %v3055_v44 = vpop.f32.mrf.mxu1 }
 0x490   :  { %v3529_v27 = vpop.eup %3528  ;;  %3542 = vpow2.f32 %v2728_v1  ;;  %v2726_v25 = vmul.f32 -1.442695, %v4724_v23  ;;  %v4728_v19 = vadd.f32 %v3055_v44, %v4685_v59 }
 0x491   :  { %3544 = vrcp.f32 %v2061_v50  ;;  %v2064_v24 = vadd.f32 1.0, %v3529_v27  ;;  %v1873_v52 = vpop.f32.mrf.mxu1 }
 0x492   :  { %v3531_v39 = vpop.eup %3530  ;;  %3546 = vpow2.f32 %v2726_v25  ;;  %v2729_v6 = vmul.f32 -1.442695, %v4728_v19  ;;  %v4732_v46 = vadd.f32 %v4685_v59, %v1873_v52 }
 0x493   :  { %3548 = vrcp.f32 %v2064_v24  ;;  %v2062_v30 = vadd.f32 1.0, %v3531_v39  ;;  %v3058_v14 = vpop.f32.mrf.mxu1 }
 0x494   :  { %v3533_v35 = vpop.eup %3532  ;;  %3550 = vpow2.f32 %v2729_v6  ;;  %v2727_v42 = vmul.f32 -1.442695, %v4732_v46  ;;  %v4736_v62 = vadd.f32 %v3058_v14, %v4685_v59 }
 0x495   :  { %3552 = vrcp.f32 %v2062_v30  ;;  %v2067_v56 = vadd.f32 1.0, %v3533_v35  ;;  %v1886_v55 = vpop.f32.mrf.mxu1 }
 0x496   :  { %v3535_v7 = vpop.eup %3534  ;;  %3554 = vpow2.f32 %v2727_v42  ;;  %v2732_v5 = vmul.f32 -1.442695, %v4736_v62  ;;  %v4740_v10 = vadd.f32 %v4685_v59, %v1886_v55 }
 0x497   :  { %3556 = vrcp.f32 %v2067_v56  ;;  %v2065_v18 = vadd.f32 1.0, %v3535_v7  ;;  %v3059_v36 = vpop.f32.mrf.mxu1 }
 0x498   :  { %v3537_v3 = vpop.eup %3536  ;;  %3558 = vpow2.f32 %v2732_v5  ;;  %v2730_v31 = vmul.f32 -1.442695, %v4740_v10  ;;  %v4744_v53 = vadd.f32 %v3059_v36, %v4685_v59 }
 0x499   :  { %3560 = vrcp.f32 %v2065_v18  ;;  %v2068_v45 = vadd.f32 1.0, %v3537_v3  ;;  %v1889_v32 = vpop.f32.mrf.mxu1 }
 0x49a   :  { %v3539_v1 = vpop.eup %3538  ;;  %3562 = vpow2.f32 %v2730_v31  ;;  %v2733_v50 = vmul.f32 -1.442695, %v4744_v53  ;;  %v4748_v44 = vadd.f32 %v4685_v59, %v1889_v32 }
 0x49b   :  { %3564 = vrcp.f32 %v2068_v45  ;;  %v2066_v27 = vadd.f32 1.0, %v3539_v1 }
 0x49c   :  { %v3541_v25 = vpop.eup %3540  ;;  %3566 = vpow2.f32 %v2733_v50  ;;  %v2731_v24 = vmul.f32 -1.442695, %v4748_v44 }
 0x49d   :  { %v3543_v52 = vpop.eup %3542  ;;  %3568 = vrcp.f32 %v2066_v27  ;;  %v2159_v56 = vmul.f32 %v3541_v25, %v4688_v26 }
 0x49e   :  { %v3545_v39 = vpop.eup %3544  ;;  %v2071_v6 = vadd.f32 1.0, %v3543_v52  ;;  %3570 = vpow2.f32 %v2731_v24  ;;  %v3062_v30 = vpop.f32.mrf.mxu1 }
 0x49f   :  { %v3547_v14 = vpop.eup %3546  ;;  %v4752_v35 = vadd.f32 %v3062_v30, %v4685_v59  ;;  %v2157_v55 = vmul.f32 %v3545_v39, %v4692_v54 }
 0x4a0   :  { %v3549_v42 = vpop.eup %3548  ;;  %v2069_v7 = vadd.f32 1.0, %v3547_v14  ;;  %v1902_v5 = vpop.f32.mrf.mxu1  ;;  %3572 = vrcp.f32 %v2071_v6  ;;  %v2191_v6 = vadd.f32 %v2159_v56, %v4265_v47 }
 0x4a1   :  { %v3551_v18 = vpop.eup %3550  ;;  %v2160_v36 = vmul.f32 %v3549_v42, %v4696_v29  ;;  %v2736_v3 = vmul.f32 -1.442695, %v4752_v35  ;;  %v4759_v31 = vadd.f32 %v4685_v59, %v1902_v5  ;;  %v2189_v30 = vadd.f32 %v2157_v55, %v4259_v28 }
 0x4a2   :  { %v3553_v45 = vpop.eup %3552  ;;  %3574 = vrcp.f32 %v2069_v7  ;;  %v2072_v32 = vadd.f32 1.0, %v3551_v18  ;;  %v3063_v1 = vpop.f32.mrf.mxu1 }
 0x4a3   :  { %v3555_v50 = vpop.eup %3554  ;;  %v2158_v26 = vmul.f32 %v3553_v45, %v4700_v20  ;;  %3576 = vpow2.f32 %v2736_v3  ;;  %v2734_v54 = vmul.f32 -1.442695, %v4759_v31  ;;  %v2192_v25 = vadd.f32 %v2160_v36, %v4255_v38 }
 0x4a4   :  { %v3557_v27 = vpop.eup %3556  ;;  %3578 = vrcp.f32 %v2072_v32  ;;  %v2070_v29 = vadd.f32 1.0, %v3555_v50  ;;  %v4765_v24 = vadd.f32 %v3063_v1, %v4685_v59  ;;  %v1905_v52 = vpop.f32.mrf.mxu1 }
 0x4a5   :  { %v3559_v39 = vpop.eup %3558  ;;  %v2190_v14 = vadd.f32 %v2158_v26, %v4262_v61  ;;  %3580 = vpow2.f32 %v2734_v54  ;;  %v4772_v38 = vadd.f32 %v4685_v59, %v1905_v52  ;;  %v2227_v56 = vpack.c.bf16 %v2192_v25, %v2191_v6 }
 0x4a6   :  { %v3561_v20 = vpop.eup %3560  ;;  %3582 = vrcp.f32 %v2070_v29  ;;  %v2075_v42 = vadd.f32 1.0, %v3559_v39  ;;  %v2737_v7 = vmul.f32 -1.442695, %v4765_v24  ;;  %v3066_v5 = vpop.f32.mrf.mxu1  ;;  %v2163_v54 = vmul.f32 %v3557_v27, %v4704_v40 }
 0x4a7   :  { %v3563_v18 = vpop.eup %3562  ;;  %v2226_v36 = vpack.c.bf16 %v2190_v14, %v2189_v30  ;;  %v4775_v3 = vadd.f32 %v3066_v5, %v4685_v59  ;;  %v2735_v61 = vmul.f32 -1.442695, %v4772_v38  ;;  %v2161_v32 = vmul.f32 %v3561_v20, %v4708_v2 }
 0x4a8   :  { %v3565_v47 = vpop.eup %3564  ;;  %3584 = vrcp.f32 %v2075_v42  ;;  %v2073_v28 = vadd.f32 1.0, %v3563_v18  ;;  %v1918_v55 = vpop.f32.mrf.mxu1 }
 0x4a9   :  { %v3567_v45 = vpop.eup %3566  ;;  %v2164_v1 = vmul.f32 %v3565_v47, %v4712_v17  ;;  %3586 = vpow2.f32 %v2737_v7  ;;  %v2740_v50 = vmul.f32 -1.442695, %v4775_v3  ;;  %3080 = vmatprep.mubr.msk.bf16.mxu0 %vm335_vm0, %v2226_v36  ;;  %v4784_v29 = vadd.f32 %v4685_v59, %v1918_v55 }
 0x4aa   :  { %v3569_v26 = vpop.eup %3568  ;;  %3588 = vrcp.f32 %v2073_v28  ;;  %v2076_v25 = vadd.f32 1.0, %v3567_v45  ;;  %v3067_v52 = vpop.f32.mrf.mxu1  ;;  %3081 = vmatmul.mubr.msk.bf16.vlgmr.msra.gmra.mxu0 %vm335_vm0, %v2227_v56  ;;  %v2193_v14 = vadd.f32 %v2161_v32, %v4296_v0 }
 0x4ab   :  { %v3571_v39 = vpop.eup %3570  ;;  %v2162_v2 = vmul.f32 %v3569_v26, %v4716_v11  ;;  %3590 = vpow2.f32 %v2735_v61  ;;  %v4789_v17 = vadd.f32 %v3067_v52, %v4685_v59  ;;  %v2196_v6 = vadd.f32 %v2164_v1, %v4288_v43 }
 0x4ac   :  { %3592 = vrcp.f32 %v2076_v25  ;;  %v2074_v30 = vadd.f32 1.0, %v3571_v39  ;;  %v2738_v40 = vmul.f32 -1.442695, %v4784_v29  ;;  %v1921_v27 = vpop.f32.mrf.mxu1  ;;  %v2195_v11 = vadd.f32 %v2163_v54, %v4302_v21 }
 0x4ad   :  { %v2194_v20 = vadd.f32 %v2162_v2, %v4299_v9  ;;  %3594 = vpow2.f32 %v2740_v50  ;;  %v2741_v42 = vmul.f32 -1.442695, %v4789_v17  ;;  %v3573_v7 = vpop.eup %3572  ;;  %v4798_v5 = vadd.f32 %v4685_v59, %v1921_v27 }
 0x4ae   :  { %3596 = vrcp.f32 %v2074_v30  ;;  %v2229_v56 = vpack.c.bf16 %v2196_v6, %v2195_v11  ;;  %v2167_v28 = vmul.f32 %v3573_v7, %v4720_v51 }
 0x4af   :  { %v3575_v43 = vpop.eup %3574  ;;  %v2228_v18 = vpack.c.bf16 %v2194_v20, %v2193_v14  ;;  %3598 = vpow2.f32 %v2738_v40  ;;  %v3070_v36 = vpop.f32.mrf.mxu1  ;;  %v2739_v0 = vmul.f32 -1.442695, %v4798_v5 }
 0x4b0   :  { %v3577_v47 = vpop.eup %3576  ;;  %3600 = vpow2.f32 %v2741_v42  ;;  %v4803_v61 = vadd.f32 %v3070_v36, %v4685_v59  ;;  %v2165_v45 = vmul.f32 %v3575_v43, %v4724_v23  ;;  %v2199_v40 = vadd.f32 %v2167_v28, %v4334_v8 }
 0x4b1   :  { %v3579_v9 = vpop.eup %3578  ;;  %v1934_v21 = vpop.f32.mrf.mxu1  ;;  %3084 = vmatprep.mubr.msk.bf16.mxu0 %vm335_vm0, %v2228_v18  ;;  %3602 = vpow2.f32 %v2739_v0  ;;  %v2079_v26 = vadd.f32 1.0, %v3577_v47 }
 0x4b2   :  { %v3581_v55 = vpop.eup %3580  ;;  %v2168_v32 = vmul.f32 %v3579_v9, %v4728_v19  ;;  %v4809_v1 = vadd.f32 %v4685_v59, %v1934_v21  ;;  %3085 = vmatmul.mubr.msk.bf16.gmra.mxu0 %vm335_vm0, %v2229_v56  ;;  %v2744_v54 = vmul.f32 -1.442695, %v4803_v61  ;;  %v2197_v27 = vadd.f32 %v2165_v45, %v4337_v15 }
 0x4b3   :  { %v3583_v50 = vpop.eup %3582  ;;  %v2077_v51 = vadd.f32 1.0, %v3581_v55  ;;  %v3071_v25 = vpop.f32.mrf.mxu1 }
 0x4b4   :  { %v2200_v52 = vadd.f32 %v2168_v32, %v4326_v12  ;;  %v2166_v39 = vmul.f32 %v3583_v50, %v4732_v46  ;;  %v2742_v23 = vmul.f32 -1.442695, %v4809_v1  ;;  %v4817_v19 = vadd.f32 %v3071_v25, %v4685_v59 }
 0x4b5   :  { %v3585_v2 = vpop.eup %3584  ;;  %3604 = vrcp.f32 %v2077_v51  ;;  %v1937_v6 = vpop.f32.mrf.mxu1 }
 0x4b6   :  { %v3587_v30 = vpop.eup %3586  ;;  %v2198_v14 = vadd.f32 %v2166_v39, %v4340_v22  ;;  %3606 = vpow2.f32 %v2744_v54  ;;  %v2745_v46 = vmul.f32 -1.442695, %v4817_v19  ;;  %v4824_v42 = vadd.f32 %v4685_v59, %v1937_v6 }
 0x4b7   :  { %v3589_v20 = vpop.eup %3588  ;;  %v2080_v12 = vadd.f32 1.0, %v3587_v30  ;;  %3608 = vpow2.f32 %v2742_v23  ;;  %v2231_v11 = vpack.c.bf16 %v2200_v52, %v2199_v40  ;;  %v2171_v56 = vmul.f32 %v3585_v2, %v4736_v62 }
 0x4b8   :  { %v3591_v7 = vpop.eup %3590  ;;  %v2230_v43 = vpack.c.bf16 %v2198_v14, %v2197_v27  ;;  %3610 = vrcp.f32 %v2079_v26  ;;  %v3074_v18 = vpop.f32.mrf.mxu1  ;;  %v2743_v15 = vmul.f32 -1.442695, %v4824_v42  ;;  %v2169_v0 = vmul.f32 %v3589_v20, %v4740_v10 }
 0x4b9   :  { %v3593_v36 = vpop.eup %3592  ;;  %3612 = vrcp.f32 %v2080_v12  ;;  %v2078_v8 = vadd.f32 1.0, %v3591_v7  ;;  %v4828_v22 = vadd.f32 %v3074_v18, %v4685_v59 }
 0x4ba   :  { %v3595_v47 = vpop.eup %3594  ;;  %v2172_v9 = vmul.f32 %v3593_v36, %v4744_v53  ;;  %3614 = vpow2.f32 %v2745_v46  ;;  %v1950_v28 = vpop.f32.mrf.mxu1  ;;  %3088 = vmatprep.mubr.msk.bf16.mxu0 %vm335_vm0, %v2230_v43  ;;  %v2201_v52 = vadd.f32 %v2169_v0, %v4372_v16 }
 0x4bb   :  { %v3597_v21 = vpop.eup %3596  ;;  %3616 = vrcp.f32 %v2078_v8  ;;  %v2083_v55 = vadd.f32 1.0, %v3595_v47  ;;  %v2748_v45 = vmul.f32 -1.442695, %v4828_v22  ;;  %v4836_v32 = vadd.f32 %v4685_v59, %v1950_v28  ;;  %3089 = vmatmul.mubr.msk.bf16.gmra.mxu0 %vm335_vm0, %v2231_v11 }
 0x4bc   :  { %v3599_v50 = vpop.eup %3598  ;;  %v2204_v62 = vadd.f32 %v2172_v9, %v4364_v57  ;;  %v2170_v10 = vmul.f32 %v3597_v21, %v4748_v44  ;;  %3618 = vpow2.f32 %v2743_v15  ;;  %v3075_v53 = vpop.f32.mrf.mxu1  ;;  %v2203_v44 = vadd.f32 %v2171_v56, %v4378_v60 }
 0x4bd   :  { %v3601_v26 = vpop.eup %3600  ;;  %3620 = vrcp.f32 %v2083_v55  ;;  %v2081_v51 = vadd.f32 1.0, %v3599_v50  ;;  %v2746_v54 = vmul.f32 -1.442695, %v4836_v32  ;;  %v4843_v25 = vadd.f32 %v3075_v53, %v4685_v59 }
 0x4be   :  { %v2202_v39 = vadd.f32 %v2170_v10, %v4375_v37  ;;  %v2084_v23 = vadd.f32 1.0, %v3601_v26  ;;  %3622 = vpow2.f32 %v2748_v45  ;;  %v1953_v2 = vpop.f32.mrf.mxu1  ;;  %v3603_v57 = vpop.eup %3602  ;;  %v2233_v14 = vpack.c.bf16 %v2204_v62, %v2203_v44 }
 0x4bf   :  { %3624 = vrcp.f32 %v2081_v51  ;;  %v2749_v6 = vmul.f32 -1.442695, %v4843_v25  ;;  %v4850_v30 = vadd.f32 %v4685_v59, %v1953_v2  ;;  %v2082_v27 = vadd.f32 1.0, %v3603_v57 }
 0x4c0   :  { %v2232_v40 = vpack.c.bf16 %v2202_v39, %v2201_v52  ;;  %3626 = vrcp.f32 %v2084_v23 }
 0x4c1   :  { %3628 = vpow2.f32 %v2746_v54  ;;  %v2747_v16 = vmul.f32 -1.442695, %v4850_v30 }
 0x4c2   :  { %v3605_v37 = vpop.eup %3604  ;;  %3630 = vrcp.f32 %v2082_v27  ;;  %3092 = vmatprep.mubr.msk.bf16.mxu0 %vm335_vm0, %v2232_v40 }
 0x4c3   :  { %v3607_v20 = vpop.eup %3606  ;;  %3632 = vpow2.f32 %v2749_v6  ;;  %3093 = vmatmul.mubr.msk.bf16.gmra.mxu0 %vm335_vm0, %v2233_v14  ;;  %v2173_v43 = vmul.f32 %v3605_v37, %v4759_v31  ;;  %v4978_v14 = vld [vmem:[#allocation5_spill] sm:$0xff]  ;;  %v4979_v37 = vld [vmem:[#allocation6_spill] sm:$0xff] }
 0x4c4   :  { %v3609_v60 = vpop.eup %3608  ;;  %3634 = vpow2.f32 %v2747_v16  ;;  %v2087_v59 = vadd.f32 1.0, %v3607_v20 }
 0x4c5   :  { %v3611_v12 = vpop.eup %3610  ;;  %v2085_v46 = vadd.f32 1.0, %v3609_v60  ;;  %v2205_v55 = vadd.f32 %v2173_v43, %v4395_v48 }
 0x4c6   :  { %v3613_v7 = vpop.eup %3612  ;;  %v2175_v8 = vmul.f32 %v3611_v12, %v4752_v35  ;;  %v4980_v12 = vld [vmem:[#allocation7_spill] sm:$0xff] }
 0x4c7   :  { %v3615_v11 = vpop.eup %3614  ;;  %v2176_v18 = vmul.f32 %v3613_v7, %v4765_v24  ;;  %3636 = vrcp.f32 %v2085_v46 }
 0x4c8   :  { %v3617_v36 = vpop.eup %3616  ;;  %v2088_v15 = vadd.f32 1.0, %v3615_v11  ;;  %3638 = vrcp.f32 %v2087_v59  ;;  %v2207_v45 = vadd.f32 %v2175_v8, %v4401_v13  ;;  %v4982_v8 = vld [vmem:[#allocation9_spill] sm:$0xff] }
 0x4c9   :  { %v3619_v47 = vpop.eup %3618  ;;  %v2174_v56 = vmul.f32 %v3617_v36, %v4772_v38  ;;  %v2208_v9 = vadd.f32 %v2176_v18, %v4392_v41  ;;  %v4981_v18 = vld [vmem:[#allocation8_spill] sm:$0xff] }
 0x4ca   :  { %v3621_v0 = vpop.eup %3620  ;;  %3640 = vrcp.f32 %v2088_v15  ;;  %v2086_v28 = vadd.f32 1.0, %v3619_v47  ;;  %v4983_v47 = vld [vmem:[#allocation10_spill] sm:$0xff] }
 0x4cb   :  { %v3623_v21 = vpop.eup %3622  ;;  %v2206_v31 = vadd.f32 %v2174_v56, %v4398_v63  ;;  %v2235_v38 = vpack.c.bf16 %v2208_v9, %v2207_v45  ;;  %v2179_v63 = vmul.f32 %v3621_v0, %v4775_v3  ;;  %v4984_v0 = vld [vmem:[#allocation11_spill] sm:$0xff] }
 0x4cc   :  { %v3625_v24 = vpop.eup %3624  ;;  %3642 = vrcp.f32 %v2086_v28  ;;  %v2091_v35 = vadd.f32 1.0, %v3623_v21 }
 0x4cd   :  { %v3627_v50 = vpop.eup %3626  ;;  %v2234_v62 = vpack.c.bf16 %v2206_v31, %v2205_v55  ;;  %v2177_v53 = vmul.f32 %v3625_v24, %v4784_v29  ;;  %v2211_v2 = vadd.f32 %v2179_v63, %v4423_v33 }
 0x4ce   :  { %v3629_v10 = vpop.eup %3628  ;;  %v2180_v41 = vmul.f32 %v3627_v50, %v4789_v17  ;;  %3644 = vrcp.f32 %v2091_v35 }
 0x4cf   :  { %v3631_v26 = vpop.eup %3630  ;;  %v2089_v51 = vadd.f32 1.0, %v3629_v10  ;;  %3096 = vmatprep.mubr.msk.bf16.mxu0 %vm335_vm0, %v2234_v62  ;;  %v2209_v39 = vadd.f32 %v2177_v53, %v4417_v4 }
 0x4d0   :  { %v3633_v48 = vpop.eup %3632  ;;  %v2178_v54 = vmul.f32 %v3631_v26, %v4798_v5  ;;  %3097 = vmatmul.mubr.msk.bf16.gmra.mxu0 %vm335_vm0, %v2235_v38  ;;  %v2212_v29 = vadd.f32 %v2180_v41, %v4414_v34 }
 0x4d1   :  { %v3635_v13 = vpop.eup %3634  ;;  %3646 = vrcp.f32 %v2089_v51  ;;  %v2092_v52 = vadd.f32 1.0, %v3633_v48 }
 0x4d2   :  { %v2210_v17 = vadd.f32 %v2178_v54, %v4420_v58  ;;  %v2090_v23 = vadd.f32 1.0, %v3635_v13  ;;  %v2237_v44 = vpack.c.bf16 %v2212_v29, %v2211_v2 }
 0x4d3   :  { %3648 = vrcp.f32 %v2092_v52 }
 0x4d4   :  { %v2236_v57 = vpack.c.bf16 %v2210_v17, %v2209_v39  ;;  %3650 = vrcp.f32 %v2090_v23  ;;  %v3637_v3 = vpop.eup %3636 }
 0x4d5   :  { %v3639_v5 = vpop.eup %3638  ;;  %v2181_v40 = vmul.f32 %v3637_v3, %v4809_v1 }
 0x4d6   :  { %3100 = vmatprep.mubr.msk.bf16.mxu0 %vm335_vm0, %v2236_v57  ;;  %v2183_v58 = vmul.f32 %v3639_v5, %v4803_v61 }
 0x4d7   :  { %v3641_v6 = vpop.eup %3640  ;;  %v2213_v16 = vadd.f32 %v2181_v40, %v4978_v14 }
 0x4d8   :  { %v2184_v4 = vmul.f32 %v3641_v6, %v4817_v19  ;;  %3101 = vmatmul.mubr.msk.bf16.gmra.mxu0 %vm335_vm0, %v2237_v44  ;;  %v2215_v59 = vadd.f32 %v2183_v58, %v4980_v12 }
 0x4d9   :  { %v3643_v34 = vpop.eup %3642 }
 0x4da   :  { %v2182_v27 = vmul.f32 %v3643_v34, %v4824_v42  ;;  %v2216_v33 = vadd.f32 %v2184_v4, %v4436_v49 }
 0x4db   :  { %v3645_v60 = vpop.eup %3644 }
 0x4dc   :  { %v2214_v20 = vadd.f32 %v2182_v27, %v4979_v37  ;;  %v2239_v7 = vpack.c.bf16 %v2216_v33, %v2215_v59  ;;  %v2187_v42 = vmul.f32 %v3645_v60, %v4828_v22  ;;  %v2283_v22 = vpop.permute.xlu0 %2282 }
 0x4de   :  { %v3647_v46 = vpop.eup %3646  ;;  %v2238_v1 = vpack.c.bf16 %v2214_v20, %v2213_v16  ;;  %v2219_v9 = vadd.f32 %v2187_v42, %v4984_v0 }
 0x4df   :  { %v2185_v11 = vmul.f32 %v3647_v46, %v4836_v32 }
 0x4e0   :  { %v3649_v19 = vpop.eup %3648  ;;  %3104 = vmatprep.mubr.msk.bf16.mxu0 %vm335_vm0, %v2238_v1 }
 0x4e1   :  { %v3651_v61 = vpop.eup %3650  ;;  %v2188_v49 = vmul.f32 %v3649_v19, %v4843_v25  ;;  %3105 = vmatmul.mubr.msk.bf16.gmra.mxu0 %vm335_vm0, %v2239_v7  ;;  %v2217_v15 = vadd.f32 %v2185_v11, %v4982_v8  ;;  %v2281_v25 = vpop.permute.xlu1 %2280 }
 0x4e2   :  { %v2186_v43 = vmul.f32 %v3651_v61, %v4850_v30  ;;  %v4896_v21 = vsel %vm2275_vm1, %v2281_v25, %v2283_v22 }
 0x4e3   :  { %v2220_v36 = vadd.f32 %v2188_v49, %v4981_v18 }
 0x4e4   :  { %v2218_v56 = vadd.f32 %v2186_v43, %v4983_v47 }
 0x4e5   :  { %v2241_v28 = vpack.c.bf16 %v2220_v36, %v2219_v9 }
 0x4e6   :  { %v2240_v32 = vpack.c.bf16 %v2218_v56, %v2217_v15 }
 0x4e8   :  { %3108 = vmatprep.mubr.msk.bf16.mxu0 %vm335_vm0, %v2240_v32 }
 0x4e9   :  { %3109 = vmatmul.mubr.msk.bf16.gmra.mxu0 %vm335_vm0, %v2241_v28 }
 0x56a   :  { %v3082_v30 = vpop.f32.mrf.mxu0 }
 0x56b   :  { %v2378_v55 = vadd.f32 %v3082_v30, %v4896_v21 }
 0x56c   :  { %v2369_v31 = vpop.f32.mrf.mxu0 }
 0x56d   :  { %2498 = vst [vmem:[#allocation2 + $0x10] sm:$0xff] %v2378_v55  ;;  %v2370_v24 = vadd.f32 %v2369_v31, %v4896_v21 }
 0x56e   :  { %v3083_v45 = vpop.f32.mrf.mxu0 }
 0x56f   :  { %2496 = vst [vmem:[#allocation2] sm:$0xff] %v2370_v24  ;;  %v2381_v35 = vadd.f32 %v3083_v45, %v4896_v21 }
 0x570   :  { %v2372_v50 = vpop.f32.mrf.mxu0 }
 0x571   :  { %2499 = vst [vmem:[#allocation2 + $0x18] sm:$0xff] %v2381_v35  ;;  %v2373_v62 = vadd.f32 %v2372_v50, %v4896_v21 }
 0x572   :  { %v3086_v10 = vpop.f32.mrf.mxu0 }
 0x573   :  { %2497 = vst [vmem:[#allocation2 + $0x8] sm:$0xff] %v2373_v62  ;;  %v2394_v38 = vadd.f32 %v3086_v10, %v4896_v21 }
 0x574   :  { %v2385_v53 = vpop.f32.mrf.mxu0 }
 0x575   :  { %2502 = vst [vmem:[#allocation2 + $0x30] sm:$0xff] %v2394_v38  ;;  %v2386_v41 = vadd.f32 %v2385_v53, %v4896_v21 }
 0x576   :  { %v3087_v26 = vpop.f32.mrf.mxu0 }
 0x577   :  { %2500 = vst [vmem:[#allocation2 + $0x20] sm:$0xff] %v2386_v41  ;;  %v2397_v51 = vadd.f32 %v3087_v26, %v4896_v21 }
 0x578   :  { %v2388_v48 = vpop.f32.mrf.mxu0 }
 0x579   :  { %2503 = vst [vmem:[#allocation2 + $0x38] sm:$0xff] %v2397_v51  ;;  %v2389_v63 = vadd.f32 %v2388_v48, %v4896_v21 }
 0x57b   :  { %2501 = vst [vmem:[#allocation2 + $0x28] sm:$0xff] %v2389_v63  ;;  %v3090_v54 = vpop.f32.mrf.mxu0 }
 0x57c   :  { %v2410_v13 = vadd.f32 %v3090_v54, %v4896_v21 }
 0x57d   :  { %v2401_v52 = vpop.f32.mrf.mxu0 }
 0x57e   :  { %2506 = vst [vmem:[#allocation2 + $0x50] sm:$0xff] %v2410_v13  ;;  %v2402_v39 = vadd.f32 %v2401_v52, %v4896_v21 }
 0x57f   :  { %v3091_v29 = vpop.f32.mrf.mxu0 }
 0x580   :  { %2504 = vst [vmem:[#allocation2 + $0x40] sm:$0xff] %v2402_v39  ;;  %v2413_v17 = vadd.f32 %v3091_v29, %v4896_v21 }
 0x581   :  { %v2404_v23 = vpop.f32.mrf.mxu0 }
 0x582   :  { %2507 = vst [vmem:[#allocation2 + $0x58] sm:$0xff] %v2413_v17  ;;  %v2405_v2 = vadd.f32 %v2404_v23, %v4896_v21 }
 0x583   :  { %v3094_v57 = vpop.f32.mrf.mxu0 }
 0x584   :  { %2505 = vst [vmem:[#allocation2 + $0x48] sm:$0xff] %v2405_v2  ;;  %v2426_v3 = vadd.f32 %v3094_v57, %v4896_v21 }
 0x585   :  { %v2417_v5 = vpop.f32.mrf.mxu0 }
 0x586   :  { %2510 = vst [vmem:[#allocation2 + $0x70] sm:$0xff] %v2426_v3  ;;  %v2418_v44 = vadd.f32 %v2417_v5, %v4896_v21 }
 0x587   :  { %v3095_v6 = vpop.f32.mrf.mxu0 }
 0x588   :  { %2508 = vst [vmem:[#allocation2 + $0x60] sm:$0xff] %v2418_v44  ;;  %v2429_v40 = vadd.f32 %v3095_v6, %v4896_v21 }
 0x589   :  { %v2420_v4 = vpop.f32.mrf.mxu0 }
 0x58a   :  { %2511 = vst [vmem:[#allocation2 + $0x78] sm:$0xff] %v2429_v40  ;;  %v2421_v34 = vadd.f32 %v2420_v4, %v4896_v21 }
 0x58c   :  { %2509 = vst [vmem:[#allocation2 + $0x68] sm:$0xff] %v2421_v34 }
 0x590   :  { %v3098_v58 = vpop.f32.mrf.mxu0 }
 0x591   :  { %v2442_v27 = vadd.f32 %v3098_v58, %v4896_v21 }
 0x592   :  { %v2433_v33 = vpop.f32.mrf.mxu0 }
 0x593   :  { %2514 = vst [vmem:[#allocation2 + $0x90] sm:$0xff] %v2442_v27  ;;  %v2434_v14 = vadd.f32 %v2433_v33, %v4896_v21 }
 0x594   :  { %v3099_v16 = vpop.f32.mrf.mxu0 }
 0x595   :  { %2512 = vst [vmem:[#allocation2 + $0x80] sm:$0xff] %v2434_v14  ;;  %v2445_v37 = vadd.f32 %v3099_v16, %v4896_v21 }
 0x596   :  { %v2436_v20 = vpop.f32.mrf.mxu0 }
 0x597   :  { %2515 = vst [vmem:[#allocation2 + $0x98] sm:$0xff] %v2445_v37  ;;  %v2437_v60 = vadd.f32 %v2436_v20, %v4896_v21 }
 0x598   :  { %v3102_v12 = vpop.f32.mrf.mxu0 }
 0x599   :  { %2513 = vst [vmem:[#allocation2 + $0x88] sm:$0xff] %v2437_v60  ;;  %v2458_v59 = vadd.f32 %v3102_v12, %v4896_v21 }
 0x59a   :  { %v2449_v46 = vpop.f32.mrf.mxu0 }
 0x59b   :  { %2518 = vst [vmem:[#allocation2 + $0xb0] sm:$0xff] %v2458_v59  ;;  %v2450_v1 = vadd.f32 %v2449_v46, %v4896_v21 }
 0x59c   :  { %v3103_v7 = vpop.f32.mrf.mxu0 }
 0x59d   :  { %2516 = vst [vmem:[#allocation2 + $0xa0] sm:$0xff] %v2450_v1  ;;  %v2461_v19 = vadd.f32 %v3103_v7, %v4896_v21 }
 0x59e   :  { %v2452_v11 = vpop.f32.mrf.mxu0 }
 0x59f   :  { %2519 = vst [vmem:[#allocation2 + $0xb8] sm:$0xff] %v2461_v19  ;;  %v2453_v61 = vadd.f32 %v2452_v11, %v4896_v21 }
 0x5a1   :  { %2517 = vst [vmem:[#allocation2 + $0xa8] sm:$0xff] %v2453_v61  ;;  %v3106_v42 = vpop.f32.mrf.mxu0 }
 0x5a2   :  { %v2474_v49 = vadd.f32 %v3106_v42, %v4896_v21 }
 0x5a3   :  { %v2465_v43 = vpop.f32.mrf.mxu0 }
 0x5a4   :  { %2522 = vst [vmem:[#allocation2 + $0xd0] sm:$0xff] %v2474_v49  ;;  %v2466_v18 = vadd.f32 %v2465_v43, %v4896_v21 }
 0x5a5   :  { %v3107_v36 = vpop.f32.mrf.mxu0 }
 0x5a6   :  { %2520 = vst [vmem:[#allocation2 + $0xc0] sm:$0xff] %v2466_v18  ;;  %v2477_v8 = vadd.f32 %v3107_v36, %v4896_v21 }
 0x5a7   :  { %v2468_v15 = vpop.f32.mrf.mxu0 }
 0x5a8   :  { %2523 = vst [vmem:[#allocation2 + $0xd8] sm:$0xff] %v2477_v8  ;;  %v2469_v47 = vadd.f32 %v2468_v15, %v4896_v21 }
 0x5a9   :  { %v3110_v56 = vpop.f32.mrf.mxu0 }
 0x5aa   :  { %2521 = vst [vmem:[#allocation2 + $0xc8] sm:$0xff] %v2469_v47  ;;  %v2490_v0 = vadd.f32 %v3110_v56, %v4896_v21 }
 0x5ab   :  { %v2481_v9 = vpop.f32.mrf.mxu0 }
 0x5ac   :  { %2526 = vst [vmem:[#allocation2 + $0xf0] sm:$0xff] %v2490_v0  ;;  %v2482_v32 = vadd.f32 %v2481_v9, %v4896_v21 }
 0x5ad   :  { %v3111_v28 = vpop.f32.mrf.mxu0 }
 0x5ae   :  { %2524 = vst [vmem:[#allocation2 + $0xe0] sm:$0xff] %v2482_v32  ;;  %v2493_v22 = vadd.f32 %v3111_v28, %v4896_v21 }
 0x5af   :  { %v2484_v25 = vpop.f32.mrf.mxu0 }
 0x5b0   :  { %2527 = vst [vmem:[#allocation2 + $0xf8] sm:$0xff] %v2493_v22  ;;  %v2485_v30 = vadd.f32 %v2484_v25, %v4896_v21 }
 0x5b2   :  { %2525 = vst [vmem:[#allocation2 + $0xe8] sm:$0xff] %v2485_v30 }
 0x5b3   :  { %3663 = shalt.err (!%p3660_p4)
}
 0x5b4   :  { %s3678_s11 = smov 128   ;;  %s3679_s12 = smov 8  }
 0x5b5   :  { %2539 = dma.vmem_to_hbm [thread:$0]  %s2534_s7, 4096, %s4936_s3, [#allocation3], %s3678_s11, %s3678_s11, %s3679_s12  }
 0x5b6   :  { %3672 = dma.done.wait [#allocation3], 4096  }
 0x5b7   :  { %3673 = vsyncadd [#allocation3], 4294963200 }
 0x5b8   :  { %2543 = vsyncpa [#allocation3], 1 }

</bundles_post_ra>
